<compile_context>
chip_gen: v7x
topology: tpu7x:2x2x1
jax: 0.10.0
libtpu: 0.0.40
codegen_flags: <defaults>
</compile_context>

<pallas_src>
import functools

import jax
import jax.numpy as jnp
from jax.experimental import pallas as pl
from jax.experimental.pallas import tpu as pltpu


def conv_stats_kernel(x_ref, w_ref, y_ref, stats_ref, fbuf_ref,
                      *, H, W, C, Cout):
    # x_ref    : (1, H, W, C)    bf16  un-padded NHWC input, one batch element
    # w_ref    : (9, C, Cout)    bf16  conv weights, tap-major (dh*3+dw)
    # y_ref    : (1, H, W, Cout) bf16  conv output for this batch element
    # stats_ref: (1, 1, 2*Cout)  f32   [sum(y) | sum(y^2)] for this image
    # fbuf_ref : ((H+4)*W, C)    bf16  scratch: vertically-halo'd input,
    #                            flattened so every tap is a plain row slice.

    # Zero only the halo rows; the interior is fully overwritten below.  Done
    # every grid step (no program_id guard) so each megacore core has a valid
    # halo in its private scratch.
    fbuf_ref[0:2 * W, :] = jnp.zeros((2 * W, C), jnp.bfloat16)
    fbuf_ref[2 * W + H * W:(H + 4) * W, :] = jnp.zeros((2 * W, C), jnp.bfloat16)

    # ReLU on the un-padded input (relu(0) == 0, so the zero halo is kept).
    # Padded image row i lives at flattened rows [(i+1)*W, (i+2)*W); the image
    # interior starts at the sublane-aligned offset 2*W.
    fbuf_ref[2 * W:2 * W + H * W, :] = (
        jnp.maximum(x_ref[0], 0.0).reshape(H * W, C))

    # Column masks for the horizontal boundary taps: the flattened row shift
    # wraps across image rows, and those wrapped entries must read as zero.
    row_idx = jax.lax.broadcasted_iota(jnp.int32, (H * W, C), 0)
    if (W & (W - 1)) == 0:
        col = row_idx & (W - 1)
    else:
        col = jax.lax.rem(row_idx, W)
    first_col = col == 0
    last_col = col == W - 1

    # 9 taps as shifted row slices straight off the scratch ref, each feeding a
    # bf16 MXU matmul that accumulates into one f32 value (no patch concat).
    acc = None
    for dh in range(3):
        for dw in range(3):
            start = (dh + 1) * W + (dw - 1)
            p = fbuf_ref[start:start + H * W, :]        # = x_pad[h+dh, w+dw, :]
            if dw == 0:
                p = jnp.where(first_col, 0.0, p)
            elif dw == 2:
                p = jnp.where(last_col, 0.0, p)
            d = jnp.dot(p, w_ref[dh * 3 + dw],
                        preferred_element_type=jnp.float32)
            acc = d if acc is None else acc + d         # (H*W, Cout) f32

    y_ref[0] = acc.reshape(H, W, Cout).astype(y_ref.dtype)

    # Per-grid-step partial BN statistics packed into one tiny output DMA;
    # the (N, Cout)-sized reduction/affine happens in the wrapper so the batch
    # axis stays "parallel" (megacore sharding on v7x).
    s = jnp.sum(acc, axis=0, keepdims=True)             # (1, Cout)
    sq = jnp.sum(acc * acc, axis=0, keepdims=True)      # (1, Cout)
    stats_ref[0] = jnp.concatenate([s, sq], axis=-1)    # (1, 2*Cout)


def relu_conv_bn(x_nchw, w_oihw, gamma, beta, eps=1e-5):
    N, C, H, W = x_nchw.shape
    Cout = w_oihw.shape[0]
    assert w_oihw.shape == (Cout, C, 3, 3)

    # Layout glue: NCHW -> NHWC (C on lanes); cast MXU operands to bf16 here so
    # the casts fuse into the transpose and the kernel DMAs half the bytes.
    x_nhwc = jnp.transpose(x_nchw, (0, 2, 3, 1)).astype(jnp.bfloat16)
    w_taps = jnp.transpose(w_oihw, (2, 3, 1, 0)).reshape(9, C, Cout)
    w_taps = w_taps.astype(jnp.bfloat16)

    kern = functools.partial(conv_stats_kernel, H=H, W=W, C=C, Cout=Cout)
    flops = 2 * N * H * W * 9 * C * Cout
    bytes_accessed = (2 * N * H * W * C + 2 * 9 * C * Cout
                      + 2 * N * H * W * Cout + 4 * N * 2 * Cout)

    y_nhwc, stats = pl.pallas_call(
        kern,
        out_shape=(
            jax.ShapeDtypeStruct((N, H, W, Cout), jnp.bfloat16),
            jax.ShapeDtypeStruct((N, 1, 2 * Cout), jnp.float32),
        ),
        grid_spec=pltpu.PrefetchScalarGridSpec(
            num_scalar_prefetch=0,
            grid=(N,),
            in_specs=[
                pl.BlockSpec((1, H, W, C), lambda n: (n, 0, 0, 0)),
                pl.BlockSpec((9, C, Cout), lambda n: (0, 0, 0)),
            ],
            out_specs=[
                pl.BlockSpec((1, H, W, Cout), lambda n: (n, 0, 0, 0)),
                pl.BlockSpec((1, 1, 2 * Cout), lambda n: (n, 0, 0)),
            ],
            scratch_shapes=[pltpu.VMEM(((H + 4) * W, C), jnp.bfloat16)],
        ),
        compiler_params=pltpu.CompilerParams(
            dimension_semantics=("parallel",),
            vmem_limit_bytes=32 * 1024 * 1024,
        ),
        cost_estimate=pl.CostEstimate(
            flops=flops, transcendentals=0, bytes_accessed=bytes_accessed),
    )(x_nhwc, w_taps)

    # Training-mode BN statistics (biased variance, as in PyTorch's forward);
    # reduction over the tiny (N, 2*Cout) partials stays in f32.
    count = jnp.float32(N * H * W)
    mean = jnp.sum(stats[:, 0, :Cout], axis=0) / count
    var = jnp.sum(stats[:, 0, Cout:], axis=0) / count - mean * mean
    var = jnp.maximum(var, 0.0)
    inv_std = jax.lax.rsqrt(var + eps)
    scale = gamma * inv_std
    shift = beta - mean * scale

    # BN affine + upcast folded into the NHWC -> NCHW transpose (XLA fuses the
    # elementwise op into the copy -> single extra HBM read of the bf16 y).
    # TODO(synk): PyTorch also updates running_mean/running_var here; that
    # module state is not produced (the forward output is unaffected).
    o_nhwc = y_nhwc.astype(jnp.float32) * scale + shift
    return jnp.transpose(o_nhwc, (0, 3, 1, 2))


if __name__ == "__main__":
    # Channels are fixed at 128 by the module; small batch / spatial size.
    N, C, H, W = 2, 128, 16, 16

    key = jax.random.PRNGKey(0)
    kx, kw, kg, kb = jax.random.split(key, 4)

    x = jax.random.normal(kx, (N, C, H, W), dtype=jnp.float32)
    w = jax.random.normal(kw, (C, C, 3, 3), dtype=jnp.float32) * 0.05
    gamma = 1.0 + 0.1 * jax.random.normal(kg, (C,), dtype=jnp.float32)
    beta = 0.1 * jax.random.normal(kb, (C,), dtype=jnp.float32)

    out = jax.block_until_ready(jax.jit(relu_conv_bn)(x, w, gamma, beta))
    assert out.shape == (N, C, H, W), out.shape

    # Pure-XLA f32 reference with identical forward semantics.
    xr = jnp.maximum(x, 0.0)
    y = jax.lax.conv_general_dilated(
        xr, w, window_strides=(1, 1), padding=((1, 1), (1, 1)),
        dimension_numbers=("NCHW", "OIHW", "NCHW"))
    mean = jnp.mean(y, axis=(0, 2, 3))
    var = jnp.var(y, axis=(0, 2, 3))                  # biased, like PyTorch fwd
    ref = ((y - mean[None, :, None, None]) *
           jax.lax.rsqrt(var + 1e-5)[None, :, None, None] *
           gamma[None, :, None, None] + beta[None, :, None, None])
    err = float(jnp.max(jnp.abs(out - ref)))
    assert err < 5e-2, f"max abs error {err}"
    print("KERNEL_OK")
</pallas_src>

<mosaic_0001>
module attributes {stable_mosaic.version = 11 : i64} {
  func.func @conv_stats_kernel(%arg0: i32, %arg1: memref<1x16x16x128xbf16, #tpu.memory_space<vmem>>, %arg2: memref<9x128x128xbf16, #tpu.memory_space<vmem>>, %arg3: memref<1x16x16x128xbf16, #tpu.memory_space<vmem>>, %arg4: memref<1x1x256xf32, #tpu.memory_space<vmem>>, %arg5: memref<320x128xbf16, #tpu.memory_space<vmem>>) attributes {dimension_semantics = [#tpu.dimension_semantics<parallel>], iteration_bounds = array<i64: 2>, scalar_prefetch = 0 : i64, scratch_operands = 1 : i64, tpu.core_type = #tpu.core_type<tc>, window_params = [{transform_indices = @transform_0, window_bounds = array<i64: 1, 16, 16, 128>}, {pipeline_mode = #tpu.pipeline_mode<synchronous>, transform_indices = @transform_1, window_bounds = array<i64: 9, 128, 128>}, {transform_indices = @transform_2, window_bounds = array<i64: 1, 16, 16, 128>}, {transform_indices = @transform_3, window_bounds = array<i64: 1, 1, 256>}]} {
    %cst = arith.constant 0.000000e+00 : bf16
    %0 = vector.broadcast %cst : bf16 to vector<32x128xbf16>
    %c0 = arith.constant 0 : index
    %c0_0 = arith.constant 0 : index
    %1 = vector.load %arg5[%c0, %c0_0] : memref<320x128xbf16, #tpu.memory_space<vmem>>, vector<32x128xbf16>
    tpu.vector_store %arg5[%c0, %c0_0], %0 {strides = array<i32>} : memref<320x128xbf16, #tpu.memory_space<vmem>>, vector<32x128xbf16>,
    %cst_1 = arith.constant 0.000000e+00 : bf16
    %2 = vector.broadcast %cst_1 : bf16 to vector<32x128xbf16>
    %c288 = arith.constant 288 : index
    %c0_2 = arith.constant 0 : index
    %3 = vector.load %arg5[%c288, %c0_2] : memref<320x128xbf16, #tpu.memory_space<vmem>>, vector<32x128xbf16>
    tpu.vector_store %arg5[%c288, %c0_2], %2 {strides = array<i32>} : memref<320x128xbf16, #tpu.memory_space<vmem>>, vector<32x128xbf16>,
    %c0_3 = arith.constant 0 : index
    %c0_4 = arith.constant 0 : index
    %c0_5 = arith.constant 0 : index
    %c0_6 = arith.constant 0 : index
    %4 = vector.load %arg1[%c0_3, %c0_4, %c0_5, %c0_6] : memref<1x16x16x128xbf16, #tpu.memory_space<vmem>>, vector<1x16x16x128xbf16>
    %5 = vector.shape_cast %4 : vector<1x16x16x128xbf16> to vector<16x16x128xbf16>
    %cst_7 = arith.constant 0.000000e+00 : bf16
    %6 = vector.broadcast %cst_7 : bf16 to vector<16x16x128xbf16>
    %7 = arith.maximumf %5, %6 : vector<16x16x128xbf16>
    %8 = vector.shape_cast %7 : vector<16x16x128xbf16> to vector<256x128xbf16>
    %c32 = arith.constant 32 : index
    %c0_8 = arith.constant 0 : index
    %9 = vector.load %arg5[%c32, %c0_8] : memref<320x128xbf16, #tpu.memory_space<vmem>>, vector<256x128xbf16>
    tpu.vector_store %arg5[%c32, %c0_8], %8 {strides = array<i32>} : memref<320x128xbf16, #tpu.memory_space<vmem>>, vector<256x128xbf16>,
    %10 = tpu.iota {dimensions = array<i32: 0>} : vector<256x128xi32>
    %c15_i32 = arith.constant 15 : i32
    %11 = vector.broadcast %c15_i32 : i32 to vector<256x128xi32>
    %12 = arith.andi %10, %11 : vector<256x128xi32>
    %c0_i32 = arith.constant 0 : i32
    %13 = vector.broadcast %c0_i32 : i32 to vector<256x128xi32>
    %14 = arith.cmpi eq, %12, %13 : vector<256x128xi32>
    %c15_i32_9 = arith.constant 15 : i32
    %15 = vector.broadcast %c15_i32_9 : i32 to vector<256x128xi32>
    %16 = arith.cmpi eq, %12, %15 : vector<256x128xi32>
    %c15 = arith.constant 15 : index
    %c0_10 = arith.constant 0 : index
    %17 = vector.load %arg5[%c15, %c0_10] : memref<320x128xbf16, #tpu.memory_space<vmem>>, vector<256x128xbf16>
    %cst_11 = arith.constant 0.000000e+00 : f32
    %18 = arith.truncf %cst_11 : f32 to bf16
    %19 = vector.broadcast %18 : bf16 to vector<256x128xbf16>
    %20 = arith.select %14, %19, %17 : vector<256x128xi1>, vector<256x128xbf16>
    %c0_12 = arith.constant 0 : index
    %c0_13 = arith.constant 0 : index
    %c0_14 = arith.constant 0 : index
    %21 = vector.load %arg2[%c0_12, %c0_13, %c0_14] : memref<9x128x128xbf16, #tpu.memory_space<vmem>>, vector<1x128x128xbf16>
    %22 = vector.shape_cast %21 : vector<1x128x128xbf16> to vector<128x128xbf16>
    %cst_15 = arith.constant dense<0.000000e+00> : vector<256x128xf32>
    %23 = tpu.matmul %20, %22, %cst_15 {dimension_numbers = #tpu.dot_dimension_numbers<[1], [0], [0], [1], [0, 0, 1, 1], [], []>} : vector<256x128xbf16>, vector<128x128xbf16>, vector<256x128xf32> -> vector<256x128xf32>
    %c16 = arith.constant 16 : index
    %c0_16 = arith.constant 0 : index
    %24 = vector.load %arg5[%c16, %c0_16] : memref<320x128xbf16, #tpu.memory_space<vmem>>, vector<256x128xbf16>
    %c1 = arith.constant 1 : index
    %c0_17 = arith.constant 0 : index
    %c0_18 = arith.constant 0 : index
    %25 = vector.load %arg2[%c1, %c0_17, %c0_18] : memref<9x128x128xbf16, #tpu.memory_space<vmem>>, vector<1x128x128xbf16>
    %26 = vector.shape_cast %25 : vector<1x128x128xbf16> to vector<128x128xbf16>
    %cst_19 = arith.constant dense<0.000000e+00> : vector<256x128xf32>
    %27 = tpu.matmul %24, %26, %cst_19 {dimension_numbers = #tpu.dot_dimension_numbers<[1], [0], [0], [1], [0, 0, 1, 1], [], []>} : vector<256x128xbf16>, vector<128x128xbf16>, vector<256x128xf32> -> vector<256x128xf32>
    %28 = arith.addf %23, %27 : vector<256x128xf32>
    %c17 = arith.constant 17 : index
    %c0_20 = arith.constant 0 : index
    %29 = vector.load %arg5[%c17, %c0_20] : memref<320x128xbf16, #tpu.memory_space<vmem>>, vector<256x128xbf16>
    %cst_21 = arith.constant 0.000000e+00 : f32
    %30 = arith.truncf %cst_21 : f32 to bf16
    %31 = vector.broadcast %30 : bf16 to vector<256x128xbf16>
    %32 = arith.select %16, %31, %29 : vector<256x128xi1>, vector<256x128xbf16>
    %c2 = arith.constant 2 : index
    %c0_22 = arith.constant 0 : index
    %c0_23 = arith.constant 0 : index
    %33 = vector.load %arg2[%c2, %c0_22, %c0_23] : memref<9x128x128xbf16, #tpu.memory_space<vmem>>, vector<1x128x128xbf16>
    %34 = vector.shape_cast %33 : vector<1x128x128xbf16> to vector<128x128xbf16>
    %cst_24 = arith.constant dense<0.000000e+00> : vector<256x128xf32>
    %35 = tpu.matmul %32, %34, %cst_24 {dimension_numbers = #tpu.dot_dimension_numbers<[1], [0], [0], [1], [0, 0, 1, 1], [], []>} : vector<256x128xbf16>, vector<128x128xbf16>, vector<256x128xf32> -> vector<256x128xf32>
    %36 = arith.addf %28, %35 : vector<256x128xf32>
    %c31 = arith.constant 31 : index
    %c0_25 = arith.constant 0 : index
    %37 = vector.load %arg5[%c31, %c0_25] : memref<320x128xbf16, #tpu.memory_space<vmem>>, vector<256x128xbf16>
    %cst_26 = arith.constant 0.000000e+00 : f32
    %38 = arith.truncf %cst_26 : f32 to bf16
    %39 = vector.broadcast %38 : bf16 to vector<256x128xbf16>
    %40 = arith.select %14, %39, %37 : vector<256x128xi1>, vector<256x128xbf16>
    %c3 = arith.constant 3 : index
    %c0_27 = arith.constant 0 : index
    %c0_28 = arith.constant 0 : index
    %41 = vector.load %arg2[%c3, %c0_27, %c0_28] : memref<9x128x128xbf16, #tpu.memory_space<vmem>>, vector<1x128x128xbf16>
    %42 = vector.shape_cast %41 : vector<1x128x128xbf16> to vector<128x128xbf16>
    %cst_29 = arith.constant dense<0.000000e+00> : vector<256x128xf32>
    %43 = tpu.matmul %40, %42, %cst_29 {dimension_numbers = #tpu.dot_dimension_numbers<[1], [0], [0], [1], [0, 0, 1, 1], [], []>} : vector<256x128xbf16>, vector<128x128xbf16>, vector<256x128xf32> -> vector<256x128xf32>
    %44 = arith.addf %36, %43 : vector<256x128xf32>
    %c32_30 = arith.constant 32 : index
    %c0_31 = arith.constant 0 : index
    %45 = vector.load %arg5[%c32_30, %c0_31] : memref<320x128xbf16, #tpu.memory_space<vmem>>, vector<256x128xbf16>
    %c4 = arith.constant 4 : index
    %c0_32 = arith.constant 0 : index
    %c0_33 = arith.constant 0 : index
    %46 = vector.load %arg2[%c4, %c0_32, %c0_33] : memref<9x128x128xbf16, #tpu.memory_space<vmem>>, vector<1x128x128xbf16>
    %47 = vector.shape_cast %46 : vector<1x128x128xbf16> to vector<128x128xbf16>
    %cst_34 = arith.constant dense<0.000000e+00> : vector<256x128xf32>
    %48 = tpu.matmul %45, %47, %cst_34 {dimension_numbers = #tpu.dot_dimension_numbers<[1], [0], [0], [1], [0, 0, 1, 1], [], []>} : vector<256x128xbf16>, vector<128x128xbf16>, vector<256x128xf32> -> vector<256x128xf32>
    %49 = arith.addf %44, %48 : vector<256x128xf32>
    %c33 = arith.constant 33 : index
    %c0_35 = arith.constant 0 : index
    %50 = vector.load %arg5[%c33, %c0_35] : memref<320x128xbf16, #tpu.memory_space<vmem>>, vector<256x128xbf16>
    %cst_36 = arith.constant 0.000000e+00 : f32
    %51 = arith.truncf %cst_36 : f32 to bf16
    %52 = vector.broadcast %51 : bf16 to vector<256x128xbf16>
    %53 = arith.select %16, %52, %50 : vector<256x128xi1>, vector<256x128xbf16>
    %c5 = arith.constant 5 : index
    %c0_37 = arith.constant 0 : index
    %c0_38 = arith.constant 0 : index
    %54 = vector.load %arg2[%c5, %c0_37, %c0_38] : memref<9x128x128xbf16, #tpu.memory_space<vmem>>, vector<1x128x128xbf16>
    %55 = vector.shape_cast %54 : vector<1x128x128xbf16> to vector<128x128xbf16>
    %cst_39 = arith.constant dense<0.000000e+00> : vector<256x128xf32>
    %56 = tpu.matmul %53, %55, %cst_39 {dimension_numbers = #tpu.dot_dimension_numbers<[1], [0], [0], [1], [0, 0, 1, 1], [], []>} : vector<256x128xbf16>, vector<128x128xbf16>, vector<256x128xf32> -> vector<256x128xf32>
    %57 = arith.addf %49, %56 : vector<256x128xf32>
    %c47 = arith.constant 47 : index
    %c0_40 = arith.constant 0 : index
    %58 = vector.load %arg5[%c47, %c0_40] : memref<320x128xbf16, #tpu.memory_space<vmem>>, vector<256x128xbf16>
    %cst_41 = arith.constant 0.000000e+00 : f32
    %59 = arith.truncf %cst_41 : f32 to bf16
    %60 = vector.broadcast %59 : bf16 to vector<256x128xbf16>
    %61 = arith.select %14, %60, %58 : vector<256x128xi1>, vector<256x128xbf16>
    %c6 = arith.constant 6 : index
    %c0_42 = arith.constant 0 : index
    %c0_43 = arith.constant 0 : index
    %62 = vector.load %arg2[%c6, %c0_42, %c0_43] : memref<9x128x128xbf16, #tpu.memory_space<vmem>>, vector<1x128x128xbf16>
    %63 = vector.shape_cast %62 : vector<1x128x128xbf16> to vector<128x128xbf16>
    %cst_44 = arith.constant dense<0.000000e+00> : vector<256x128xf32>
    %64 = tpu.matmul %61, %63, %cst_44 {dimension_numbers = #tpu.dot_dimension_numbers<[1], [0], [0], [1], [0, 0, 1, 1], [], []>} : vector<256x128xbf16>, vector<128x128xbf16>, vector<256x128xf32> -> vector<256x128xf32>
    %65 = arith.addf %57, %64 : vector<256x128xf32>
    %c48 = arith.constant 48 : index
    %c0_45 = arith.constant 0 : index
    %66 = vector.load %arg5[%c48, %c0_45] : memref<320x128xbf16, #tpu.memory_space<vmem>>, vector<256x128xbf16>
    %c7 = arith.constant 7 : index
    %c0_46 = arith.constant 0 : index
    %c0_47 = arith.constant 0 : index
    %67 = vector.load %arg2[%c7, %c0_46, %c0_47] : memref<9x128x128xbf16, #tpu.memory_space<vmem>>, vector<1x128x128xbf16>
    %68 = vector.shape_cast %67 : vector<1x128x128xbf16> to vector<128x128xbf16>
    %cst_48 = arith.constant dense<0.000000e+00> : vector<256x128xf32>
    %69 = tpu.matmul %66, %68, %cst_48 {dimension_numbers = #tpu.dot_dimension_numbers<[1], [0], [0], [1], [0, 0, 1, 1], [], []>} : vector<256x128xbf16>, vector<128x128xbf16>, vector<256x128xf32> -> vector<256x128xf32>
    %70 = arith.addf %65, %69 : vector<256x128xf32>
    %c49 = arith.constant 49 : index
    %c0_49 = arith.constant 0 : index
    %71 = vector.load %arg5[%c49, %c0_49] : memref<320x128xbf16, #tpu.memory_space<vmem>>, vector<256x128xbf16>
    %cst_50 = arith.constant 0.000000e+00 : f32
    %72 = arith.truncf %cst_50 : f32 to bf16
    %73 = vector.broadcast %72 : bf16 to vector<256x128xbf16>
    %74 = arith.select %16, %73, %71 : vector<256x128xi1>, vector<256x128xbf16>
    %c8 = arith.constant 8 : index
    %c0_51 = arith.constant 0 : index
    %c0_52 = arith.constant 0 : index
    %75 = vector.load %arg2[%c8, %c0_51, %c0_52] : memref<9x128x128xbf16, #tpu.memory_space<vmem>>, vector<1x128x128xbf16>
    %76 = vector.shape_cast %75 : vector<1x128x128xbf16> to vector<128x128xbf16>
    %cst_53 = arith.constant dense<0.000000e+00> : vector<256x128xf32>
    %77 = tpu.matmul %74, %76, %cst_53 {dimension_numbers = #tpu.dot_dimension_numbers<[1], [0], [0], [1], [0, 0, 1, 1], [], []>} : vector<256x128xbf16>, vector<128x128xbf16>, vector<256x128xf32> -> vector<256x128xf32>
    %78 = arith.addf %70, %77 : vector<256x128xf32>
    %79 = vector.shape_cast %78 : vector<256x128xf32> to vector<16x16x128xf32>
    %80 = arith.truncf %79 : vector<16x16x128xf32> to vector<16x16x128xbf16>
    %c0_54 = arith.constant 0 : index
    %c0_55 = arith.constant 0 : index
    %c0_56 = arith.constant 0 : index
    %c0_57 = arith.constant 0 : index
    %81 = vector.load %arg3[%c0_54, %c0_55, %c0_56, %c0_57] : memref<1x16x16x128xbf16, #tpu.memory_space<vmem>>, vector<1x16x16x128xbf16>
    %82 = vector.shape_cast %81 : vector<1x16x16x128xbf16> to vector<16x16x128xbf16>
    %83 = vector.shape_cast %80 : vector<16x16x128xbf16> to vector<1x16x16x128xbf16>
    tpu.vector_store %arg3[%c0_54, %c0_55, %c0_56, %c0_57], %83 {strides = array<i32>} : memref<1x16x16x128xbf16, #tpu.memory_space<vmem>>, vector<1x16x16x128xbf16>,
    %cst_58 = arith.constant dense<0.000000e+00> : vector<128xf32>
    %84 = vector.multi_reduction <add>, %78, %cst_58 [0] : vector<256x128xf32> to vector<128xf32>
    %85 = vector.shape_cast %84 : vector<128xf32> to vector<1x128xf32>
    %86 = arith.mulf %78, %78 : vector<256x128xf32>
    %cst_59 = arith.constant dense<0.000000e+00> : vector<128xf32>
    %87 = vector.multi_reduction <add>, %86, %cst_59 [0] : vector<256x128xf32> to vector<128xf32>
    %88 = vector.shape_cast %87 : vector<128xf32> to vector<1x128xf32>
    %89 = tpu.concatenate %85, %88 in 1 : vector<1x128xf32>, vector<1x128xf32> -> vector<1x256xf32>
    %c0_60 = arith.constant 0 : index
    %c0_61 = arith.constant 0 : index
    %c0_62 = arith.constant 0 : index
    %90 = vector.load %arg4[%c0_60, %c0_61, %c0_62] : memref<1x1x256xf32, #tpu.memory_space<vmem>>, vector<1x1x256xf32>
    %91 = vector.shape_cast %90 : vector<1x1x256xf32> to vector<1x256xf32>
    %92 = vector.shape_cast %89 : vector<1x256xf32> to vector<1x1x256xf32>
    tpu.vector_store %arg4[%c0_60, %c0_61, %c0_62], %92 {strides = array<i32>} : memref<1x1x256xf32, #tpu.memory_space<vmem>>, vector<1x1x256xf32>,
    return
  }
  func.func @transform_0(%arg0: i32) -> (i32, i32, i32, i32) {
    %c0_i32 = arith.constant 0 : i32
    %c0_i32_0 = arith.constant 0 : i32
    %c0_i32_1 = arith.constant 0 : i32
    %c0_i32_2 = arith.constant 0 : i32
    return %arg0, %c0_i32, %c0_i32_0, %c0_i32_1 : i32, i32, i32, i32
  }
  func.func @transform_1(%arg0: i32) -> (i32, i32, i32) {
    %c0_i32 = arith.constant 0 : i32
    %c0_i32_0 = arith.constant 0 : i32
    %c0_i32_1 = arith.constant 0 : i32
    %c0_i32_2 = arith.constant 0 : i32
    return %c0_i32, %c0_i32_0, %c0_i32_1 : i32, i32, i32
  }
  func.func @transform_2(%arg0: i32) -> (i32, i32, i32, i32) {
    %c0_i32 = arith.constant 0 : i32
    %c0_i32_0 = arith.constant 0 : i32
    %c0_i32_1 = arith.constant 0 : i32
    %c0_i32_2 = arith.constant 0 : i32
    return %arg0, %c0_i32, %c0_i32_0, %c0_i32_1 : i32, i32, i32, i32
  }
  func.func @transform_3(%arg0: i32) -> (i32, i32, i32) {
    %c0_i32 = arith.constant 0 : i32
    %c0_i32_0 = arith.constant 0 : i32
    %c0_i32_1 = arith.constant 0 : i32
    return %arg0, %c0_i32, %c0_i32_0 : i32, i32, i32
  }
}

</mosaic_0001>

<bundles_post_ra>
// kernel: relu_conv_bn.1
= control target key start
LH: loop header
LB: loop body
LE: loop exit
PB: predicated region body
PF: predicated region fallthrough
CT: control target
= control target key end

     0   :  { %s6183_s12 = smov 0   ;;  %s8258_s0 = inlined_call_operand.vmem [shape: bf16[2,16,16,128], index: 0, kind: input, shape index: {}]   ;;  %s8259_s1 = inlined_call_operand.vmem [shape: bf16[9,128,128], index: 1, kind: input, shape index: {}]   ;;  %s8260_s2 = inlined_call_operand.vmem [shape: bf16[2,16,16,128], index: 2, kind: output, shape index: {0}]   ;;  %s8261_s3 = inlined_call_operand.vmem [shape: f32[2,1,256], index: 3, kind: output, shape index: {1}]  }
   0x1 LB: > { %s4702_s13 = sadd.s32 4294967295, %s6158_s12   ;;  %p4706_p0 = scmp.ge.s32.totalorder %s6158_s12, 1  ;;  %s6158_s12 = sphi %s6183_s12, %s14_s12  }
   0x2   : > { %p140_p1 = scmp.lt.s32.totalorder %s6158_s12, 3 }
   0x4   : > { %p141_p2 = pnand %p4706_p0, %p140_p1 }
   0x6   : > { %144 = sbr.rel (%p141_p2) target bundleno = 636 (0x27c), region = 28 }
   0xd   : > { %v6054_v0 = vld [vmem:[%s8259_s1 + $0x40] sm:$0xff]   ;;  %v6056_v2 = vld [vmem:[%s8259_s1 + $0x48] sm:$0xff]   ;;  %p6200_p3 = scmp.lt.s32.totalorder %s4702_s13, 1  ;;  %v6160_v3 = vmov 0   ;;  %v6058_v5 = vld [vmem:[%s8259_s1 + $0x50] sm:$0xff]   ;;  %v8262_v9 = vlaneseq  ;;  %vm6161_vm3 = vmmov 0  }
   0xe   : > { %v6055_v1 = vld [vmem:[%s8259_s1 + $0x100] sm:$0xff]   ;;  %5339 = vmatprep.subr.bf16.mxu1 %v6054_v0  ;;  %186 = vst [vmem:[#allocation2 + $0x8] sm:$0xff] %v6160_v3  ;;  %5355 = vmatprep.mubr.bf16.mxu1 %v6160_v3  ;;  %185 = vst [vmem:[#allocation2] sm:$0xff] %v6160_v3  ;;  %v6057_v4 = vld [vmem:[%s8259_s1 + $0x108] sm:$0xff]   ;;  %vm623_vm13 = vsmask.f32 7424 }
   0xf   : > { %187 = vst [vmem:[#allocation2 + $0x90] sm:$0xff] %v6160_v3  ;;  %188 = vst [vmem:[#allocation2 + $0x98] sm:$0xff] %v6160_v3  ;;  %5531 = vmatprep.subr.bf16.mxu0 %v6055_v1  ;;  %5340 = vmatpush3.bf16.msra.mxu1 %v6054_v0  ;;  %v6059_v6 = vld [vmem:[%s8259_s1 + $0x110] sm:$0xff]   ;;  %s8576_s13 = smov (!%p6200_p3, %s4702_s13), 1  ;;  %v6060_v7 = vld [vmem:[%s8259_s1 + $0x58] sm:$0xff]   ;;  %v6243_v12 = vshrl.u32 %v8262_v9, 7 }
  0x10   : > { %5532 = vmatpush3.bf16.msra.mxu0 %v6055_v1  ;;  %5341 = vmatprep.subr.bf16.mxu1 %v6056_v2  ;;  %v6061_v8 = vld [vmem:[%s8259_s1 + $0x118] sm:$0xff]   ;;  %s4994_s4 = sshll.u32 %s8576_s13, 7  ;;  %v6062_v10 = vld [vmem:[%s8259_s1 + $0x60] sm:$0xff]   ;;  %v6064_v14 = vld [vmem:[%s8259_s1 + $0x68] sm:$0xff]  }
  0x11   : > { %5533 = vmatprep.subr.bf16.mxu0 %v6057_v4  ;;  %v6063_v11 = vld [vmem:[%s8259_s1 + $0x120] sm:$0xff]   ;;  %s6240_s11 = scalar_lea.vmem %s8258_s0, %s4994_s4  ;;  %8353 = vst [vmem:[#allocation3_spill] sm:$0xff] %v6243_v12  ;;  %v368_v13 = vadd.s32 16, %v6243_v12  ;;  %v398_v17 = vand.u32 15, %v6243_v12  ;;  %v6065_v18 = vld [vmem:[%s8259_s1 + $0x128] sm:$0xff]   ;;  %v369_v28 = vadd.s32 24, %v6243_v12  ;;  %vm512_vm4 = vmpackc.low %vm6161_vm3, %vm6161_vm3  ;;  %s8178_s16 = scalar_lea.vmem %s8260_s2, %s4994_s4 }
  0x12   : > { %v191_v15 = vld [vmem:[%s6240_s11 + $0x8] sm:$0xf]  ;;  %v192_v16 = vld [vmem:[%s6240_s11 + $0xc] sm:$0xf]  ;;  %v189_v21 = vld [vmem:[%s6240_s11] sm:$0xf] }
  0x13   : > { %5342 = vmatpush3.bf16.msra.mxu1 %v6056_v2  ;;  %v223_v19 = vmax.bf16 %v6160_v3, %v191_v15  ;;  %v224_v20 = vmax.bf16 %v6160_v3, %v192_v16  ;;  %v190_v22 = vld [vmem:[%s6240_s11 + $0x4] sm:$0xf]  ;;  %v221_v23 = vmax.bf16 %v6160_v3, %v189_v21  ;;  %v193_v25 = vld [vmem:[%s6240_s11 + $0x10] sm:$0xf]  ;;  %v400_v27 = vand.u32 15, %v368_v13  ;;  %v6068_v42 = vld [vmem:[%s8259_s1 + $0x78] sm:$0xff]  }
  0x14   : > { %5534 = vmatpush3.bf16.msra.mxu0 %v6057_v4  ;;  %5343 = vmatprep.subr.bf16.mxu1 %v6058_v5  ;;  %v222_v24 = vmax.bf16 %v6160_v3, %v190_v22  ;;  %v194_v29 = vld [vmem:[%s6240_s11 + $0x14] sm:$0xf]  ;;  %v225_v30 = vmax.bf16 %v6160_v3, %v193_v25  ;;  %vm6270_vm0 = vcmp.eq.s32.totalorder %v398_v17, 0  ;;  %v195_v35 = vld [vmem:[%s6240_s11 + $0x18] sm:$0xf]  ;;  %v401_v40 = vand.u32 15, %v369_v28 }
  0x15   : > { %5535 = vmatprep.subr.bf16.mxu0 %v6059_v6  ;;  %v6262_v26 = vcombine.low %v223_v19, %v224_v20  ;;  %v6066_v31 = vld [vmem:[%s8259_s1 + $0x70] sm:$0xff]   ;;  %v226_v34 = vmax.bf16 %v6160_v3, %v194_v29  ;;  %v196_v38 = vld [vmem:[%s6240_s11 + $0x1c] sm:$0xf]  ;;  %vm6287_vm1 = vcmp.eq.s32.totalorder %v400_v27, 0  ;;  %vm511_vm2 = vmpackc.low %vm6270_vm0, %vm6270_vm0  ;;  %v227_v41 = vmax.bf16 %v6160_v3, %v195_v35  ;;  %s4711_s4 = sshll.u32 %s8576_s13, 1 }
  0x16   : > { %v6274_v33 = vcombine.low %v221_v23, %v222_v24  ;;  %v6067_v36 = vld [vmem:[%s8259_s1 + $0x130] sm:$0xff]   ;;  %v6069_v43 = vld [vmem:[%s8259_s1 + $0x138] sm:$0xff]   ;;  %v228_v44 = vmax.bf16 %v6160_v3, %v196_v38  ;;  %vm513_vm5 = vmpackc.low %vm6287_vm1, %vm6287_vm1  ;;  %v543_v45 = vsel %vm511_vm2, 65537, %v6160_v3  ;;  %v367_v46 = vadd.s32 8, %v6243_v12  ;;  %s181_s19 = scalar_lea.vmem %s8261_s3, %s4711_s4 }
  0x17   : > { %5344 = vmatpush3.bf16.msra.mxu1 %v6058_v5  ;;  %350 = vst [vmem:[#allocation2 + $0x18] sm:$0xff] %v6262_v26  ;;  %v6284_v37 = vcombine.low %v225_v30, %v226_v34  ;;  %vm6308_vm6 = vcmp.eq.s32.totalorder %v401_v40, 15  ;;  %v370_v48 = vadd.s32 32, %v6243_v12  ;;  %v6316_v50 = vsel %vm512_vm4, 65537, %v6160_v3  ;;  %v6070_v51 = vld [vmem:[%s8259_s1] sm:$0xff]   ;;  %v6072_v61 = vld [vmem:[%s8259_s1 + $0x148] sm:$0xff]  }
  0x18   : > { %5536 = vmatpush3.bf16.msra.mxu0 %v6059_v6  ;;  %5345 = vmatprep.subr.bf16.mxu1 %v6060_v7  ;;  %349 = vst [vmem:[#allocation2 + $0x10] sm:$0xff] %v6274_v33  ;;  %v6313_v49 = vcombine.low %v227_v41, %v228_v44  ;;  %v545_v52 = vsel %vm513_vm5, 65537, %v6160_v3  ;;  %v4728_v53 = vcombine.low %v543_v45, %v6316_v50  ;;  %v6071_v54 = vld [vmem:[%s8259_s1 + $0x140] sm:$0xff]   ;;  %v399_v55 = vand.u32 15, %v367_v46  ;;  %vm1405_vm7 = vmpackc.low %vm6308_vm6, %vm6308_vm6  ;;  %v6073_v63 = vld [vmem:[%s8259_s1 + $0x8] sm:$0xff]  }
  0x19   : > { %5537 = vmatprep.subr.bf16.mxu0 %v6061_v8  ;;  %5547 = vmatprep.mubr.bf16.mxu0 %v6274_v33  ;;  %351 = vst [vmem:[#allocation2 + $0x20] sm:$0xff] %v6284_v37  ;;  %v402_v56 = vand.u32 15, %v370_v48  ;;  %v6331_v57 = vcombine.low %v545_v52, %v6316_v50  ;;  %v1437_v59 = vsel %vm1405_vm7, 65537, %v6160_v3  ;;  %v371_v60 = vadd.s32 40, %v6243_v12  ;;  %v6076_v4 = vld [vmem:[%s8259_s1 + $0x10] sm:$0xff]   ;;  %v6075_v20 = vld [vmem:[%s8259_s1 + $0x158] sm:$0xff]  }
  0x1a   : > { %352 = vst [vmem:[#allocation2 + $0x28] sm:$0xff] %v6313_v49  ;;  %v625_v58 = vshll.u32 %v4728_v53, 16  ;;  %vm6338_vm8 = vcmp.eq.s32.totalorder %v399_v55, 15  ;;  %v4777_v2 = vcombine.low %v6316_v50, %v1437_v59  ;;  %v628_v6 = vshrl.u32 %v4728_v53, 16  ;;  %v6079_v21 = vld [vmem:[%s8259_s1 + $0x18] sm:$0xff]   ;;  %v6077_v32 = vld [vmem:[%s8259_s1 + $0x160] sm:$0xff]  }
  0x1b   : > { %5346 = vmatpush3.bf16.msra.mxu1 %v6060_v7  ;;  %vm6346_vm9 = vcmp.eq.s32.totalorder %v402_v56, 0  ;;  %v632_v1 = vshll.u32 %v6331_v57, 16  ;;  %vm1403_vm10 = vmpackc.low %vm6338_vm8, %vm6338_vm8  ;;  %v403_v7 = vand.u32 15, %v371_v60  ;;  %v372_v22 = vadd.s32 48, %v6243_v12  ;;  %v6082_v34 = vld [vmem:[%s8259_s1 + $0x20] sm:$0xff]   ;;  %v6078_v45 = vld [vmem:[%s8259_s1 + $0x168] sm:$0xff]  }
  0x1c   : > { %5538 = vmatpush3.bf16.msra.mxu0 %v6061_v8  ;;  %5347 = vmatprep.subr.bf16.mxu1 %v6062_v10  ;;  %v6357_v5 = vrot.slane %v625_v58, 1  ;;  %v6074_v8 = vld [vmem:[%s8259_s1 + $0x150] sm:$0xff]   ;;  %vm515_vm11 = vmpackc.low %vm6346_vm9, %vm6346_vm9  ;;  %v1522_v15 = vshrl.u32 %v4777_v2, 16  ;;  %v1525_v25 = vshll.u32 %v4777_v2, 16  ;;  %v636_v38 = vshrl.u32 %v6331_v57, 16  ;;  %v6084_v48 = vld [vmem:[%s8259_s1 + $0x28] sm:$0xff]  }
  0x1d   : > { %5539 = vmatprep.subr.bf16.mxu0 %v6063_v11  ;;  %v634_v13 = vrot.slane %v632_v1, 1  ;;  %v547_v17 = vsel %vm515_vm11, 65537, %v6160_v3  ;;  %vm6374_vm12 = vcmp.eq.s32.totalorder %v403_v7, 15  ;;  %v404_v35 = vand.u32 15, %v372_v22  ;;  %v200_v44 = vld [vmem:[%s6240_s11 + $0x2c] sm:$0xf] }
  0x1e   : > { %8364 = vst [vmem:[#allocation4_spill] sm:$0xff] %v6357_v5  ;;  %v630_v16 = vor.u32 %v628_v6, %v6357_v5  ;;  %v6394_v27 = vcombine.low %v547_v17, %v6316_v50  ;;  %vm1407_vm14 = vmpackc.low %vm6374_vm12, %vm6374_vm12  ;;  %v6402_v30 = vrot.slane %v1522_v15, 7  ;;  %vm1027_vm0 = vsmask.f32 256  ;;  %v201_v59 = vld [vmem:[%s6240_s11 + $0x30] sm:$0xf] }
  0x1f   : > { %5348 = vmatpush3.bf16.msra.mxu1 %v6062_v10  ;;  %v197_v10 = vld [vmem:[%s6240_s11 + $0x20] sm:$0xf]  ;;  %v1439_v39 = vsel %vm1407_vm14, 65537, %v6160_v3  ;;  %vm6429_vm1 = vcmp.eq.s32.totalorder %v404_v35, 0  ;;  %v638_v52 = vor.u32 %v636_v38, %v634_v13  ;;  %v232_v55 = vmax.bf16 %v6160_v3, %v200_v44  ;;  %v202_v62 = vld [vmem:[%s6240_s11 + $0x34] sm:$0xf] }
  0x20   : > { %5540 = vmatpush3.bf16.msra.mxu0 %v6063_v11  ;;  %5349 = vmatprep.subr.bf16.mxu1 %v6064_v14  ;;  %v198_v11 = vld [vmem:[%s6240_s11 + $0x24] sm:$0xf]  ;;  %v229_v19 = vmax.bf16 %v6160_v3, %v197_v10  ;;  %v635_v29 = vsel %vm623_vm13, %v630_v16, %v634_v13  ;;  %v640_v40 = vshll.u32 %v6394_v27, 16  ;;  %v1527_v41 = vor.u32 %v1525_v25, %v6402_v30  ;;  %vm517_vm2 = vmpackc.low %vm6429_vm1, %vm6429_vm1  ;;  %v6086_v0 = vld [vmem:[%s8259_s1 + $0x30] sm:$0xff]  }
  0x21   : > { %5541 = vmatprep.subr.bf16.mxu0 %v6065_v18  ;;  %v230_v23 = vmax.bf16 %v6160_v3, %v198_v11  ;;  %vm752_vm15 = vcmp.ne.s16.totalorder %v635_v29, 0  ;;  %v4778_v46 = vcombine.low %v6316_v50, %v1439_v39  ;;  %v374_v58 = vadd.s32 64, %v6243_v12  ;;  %v6537_v38 = vld [vmem:[%s8259_s1 + $0x180] sm:$0xff]  }
  0x22   : > { %v6439_v53 = vrot.slane %v640_v40, 1  ;;  %v6467_v1 = vsel %vm752_vm15, 0, %v6262_v26  ;;  %v6471_v2 = vsel %vm752_vm15, 0, %v6274_v33  ;;  %v549_v6 = vsel %vm517_vm2, 65537, %v6160_v3  ;;  %v6090_v57 = vld [vmem:[%s8259_s1 + $0x80] sm:$0xff]  }
  0x23   : > { %5350 = vmatpush3.bf16.msra.mxu1 %v6064_v14  ;;  %v1435_v14 = vsel %vm1403_vm10, 65537, %v6160_v3  ;;  %v6399_v28 = vcombine.low %v229_v19, %v230_v23  ;;  %v1530_v60 = vshrl.u32 %v4778_v46, 16  ;;  %8372 = vst [vmem:[#allocation6_spill] sm:$0xff] %v6471_v2  ;;  %v233_v10 = vmax.bf16 %v6160_v3, %v201_v59  ;;  %v6081_v19 = vld [vmem:[%s8259_s1 + $0x178] sm:$0xff]  }
  0x24   : > { %5542 = vmatpush3.bf16.msra.mxu0 %v6065_v18  ;;  %5351 = vmatprep.subr.bf16.mxu1 %v6066_v31  ;;  %v6389_v24 = vcombine.low %v6316_v50, %v1435_v14  ;;  %v234_v11 = vmax.bf16 %v6160_v3, %v202_v62  ;;  %v1533_v14 = vshll.u32 %v4778_v46, 16  ;;  %v375_v15 = vadd.s32 72, %v6243_v12  ;;  %v6088_v23 = vld [vmem:[%s8259_s1 + $0x38] sm:$0xff]  }
  0x25   : > { %5543 = vmatprep.subr.bf16.mxu0 %v6067_v36  ;;  %353 = vst [vmem:[#allocation2 + $0x30] sm:$0xff] %v6399_v28  ;;  %v6492_v13 = vrot.slane %v1530_v60, 7  ;;  %v3245_v16 = vshrl.u32 %v6467_v1, 16  ;;  %v6498_v17 = vcombine.low %v549_v6, %v6316_v50  ;;  %v6517_v25 = vrot.slane %v6160_v3, 7 }
  0x26   : > { %v6511_v22 = vcombine.low %v233_v10, %v234_v11  ;;  %v376_v46 = vadd.s32 80, %v6243_v12  ;;  %v378_v11 = vadd.s32 96, %v6243_v12 }
  0x27   : > { %5352 = vmatpush3.bf16.msra.mxu1 %v6066_v31  ;;  %v373_v31 = vadd.s32 56, %v6243_v12  ;;  %v6539_v39 = vrot.slane %v3245_v16, 7 }
  0x28   : > { %5544 = vmatpush3.bf16.msra.mxu0 %v6067_v36  ;;  %5353 = vmatprep.subr.bf16.mxu1 %v6068_v42  ;;  %v1515_v36 = vshrl.u32 %v6389_v24, 16  ;;  %355 = vst [vmem:[#allocation2 + $0x40] sm:$0xff] %v6511_v22 }
  0x29   : > { %5545 = vmatprep.subr.bf16.mxu0 %v6069_v43 }
  0x2b   : > { %5354 = vmatpush3.bf16.msra.mxu1 %v6068_v42  ;;  %v405_v42 = vand.u32 15, %v373_v31  ;;  %v377_v31 = vadd.s32 88, %v6243_v12 }
  0x2c   : > { %5546 = vmatpush3.bf16.msra.mxu0 %v6069_v43  ;;  %5387 = vmatprep.subr.bf16.mxu1 %v6070_v51  ;;  %v199_v43 = vld [vmem:[%s6240_s11 + $0x28] sm:$0xf] }
  0x2d   : > { %5579 = vmatprep.subr.bf16.mxu0 %v6071_v54  ;;  %vm6450_vm3 = vcmp.eq.s32.totalorder %v405_v42, 15  ;;  %v648_v42 = vshll.u32 %v6498_v17, 16 }
  0x2e   : > { %5356 = vmatmul.mubr.bf16.vlgmr.msra.gmra.mrb[0].mxu1 %v6274_v33  ;;  %vm1409_vm5 = vmpackc.low %vm6450_vm3, %vm6450_vm3 }
  0x2f   : > { %5548 = vmatmul.mubr.bf16.vlgmr.msra.gmra.mrb[0].mxu0 %v6262_v26  ;;  %5388 = vmatpush3.bf16.msra.mxu1 %v6070_v51  ;;  %v6437_v51 = vrot.slane %v1515_v36, 7  ;;  %v1441_v18 = vsel %vm1409_vm5, 65537, %v6160_v3  ;;  %v407_v36 = vand.u32 15, %v375_v15  ;;  %v650_v60 = vrot.slane %v648_v42, 1 }
  0x30   : > { %5580 = vmatpush3.bf16.msra.mxu0 %v6071_v54  ;;  %5359 = vmatprep.mubr.bf16.mxu1 %v6262_v26  ;;  %v231_v54 = vmax.bf16 %v6160_v3, %v199_v43  ;;  %v4779_v35 = vcombine.low %v6316_v50, %v1441_v18  ;;  %v410_v42 = vand.u32 15, %v378_v11 }
  0x31   : > { %5581 = vmatprep.subr.bf16.mxu0 %v6072_v61  ;;  %5551 = vmatprep.mubr.bf16.mxu0 %v6284_v37  ;;  %v6445_v56 = vsel %vm1027_vm0, %v6437_v51, %v1527_v41  ;;  %v644_v41 = vshrl.u32 %v6394_v27, 16  ;;  %vm6564_vm9 = vcmp.eq.s32.totalorder %v407_v36, 15 }
  0x32   : > { %5389 = vmatprep.subr.bf16.mxu1 %v6073_v63  ;;  %8369 = vst [vmem:[#allocation5_spill] sm:$0xff] %v6445_v56  ;;  %vm8292_vm4 = vcmp.ne.s16.totalorder %v6445_v56, 0  ;;  %vm1411_vm11 = vmpackc.low %vm6564_vm9, %vm6564_vm9  ;;  %vm6654_vm1 = vcmp.eq.s32.totalorder %v410_v42, 0  ;;  %v383_v42 = vadd.s32 136, %v6243_v12 }
  0x33   : > { %5390 = vmatpush3.bf16.msra.mxu1 %v6073_v63  ;;  %v6080_v63 = vld [vmem:[%s8259_s1 + $0x170] sm:$0xff]   ;;  %v6488_v7 = vsel %vm8292_vm4, 0, %v6274_v33  ;;  %v646_v59 = vor.u32 %v644_v41, %v6439_v53  ;;  %v1443_v16 = vsel %vm1411_vm11, 65537, %v6160_v3  ;;  %vm523_vm5 = vmpackc.low %vm6654_vm1, %vm6654_vm1 }
  0x34   : > { %5582 = vmatpush3.bf16.msra.mxu0 %v6072_v61  ;;  %5391 = vmatprep.subr.bf16.mxu1 %v6076_v4  ;;  %v6456_v61 = vcombine.low %v231_v54, %v232_v55  ;;  %v1704_v44 = vshrl.u32 %v6488_v7, 16  ;;  %v1538_v54 = vshrl.u32 %v4779_v35, 16  ;;  %v4780_v41 = vcombine.low %v6316_v50, %v1443_v16  ;;  %v205_v55 = vld [vmem:[%s6240_s11 + $0x40] sm:$0xf]  ;;  %v206_v16 = vld [vmem:[%s6240_s11 + $0x44] sm:$0xf] }
  0x35   : > { %5583 = vmatprep.subr.bf16.mxu0 %v6074_v8  ;;  %v651_v10 = vsel %vm623_vm13, %v646_v59, %v650_v60 }
  0x36   : > { %5360 = vmatmul.mubr.bf16.gmra.mrb[4].mxu1 %v6284_v37  ;;  %354 = vst [vmem:[#allocation2 + $0x38] sm:$0xff] %v6456_v61  ;;  %v6591_v6 = vrot.slane %v1538_v54, 7  ;;  %vm754_vm14 = vcmp.ne.s16.totalorder %v651_v10, 0 }
  0x37   : > { %5552 = vmatmul.mubr.bf16.gmra.mrb[4].mxu0 %v6313_v49  ;;  %5363 = vmatprep.mubr.bf16.mxu1 %v6313_v49  ;;  %v6637_v59 = vsel %vm754_vm14, 0, %v6262_v26  ;;  %v6666_v18 = vsel %vm754_vm14, 0, %v6284_v37 }
  0x38   : > { %5584 = vmatpush3.bf16.msra.mxu0 %v6074_v8  ;;  %5392 = vmatpush3.bf16.msra.mxu1 %v6076_v4  ;;  %v6476_v4 = vsel %vm623_vm13, %v638_v52, %v6439_v53  ;;  %v406_v8 = vand.u32 15, %v374_v58  ;;  %8392 = vst [vmem:[#allocation18_spill] sm:$0xff] %v6666_v18  ;;  %v1549_v58 = vshll.u32 %v4780_v41, 16 }
  0x39   : > { %5585 = vmatprep.subr.bf16.mxu0 %v6075_v20  ;;  %5393 = vmatprep.subr.bf16.mxu1 %v6079_v21  ;;  %vm753_vm6 = vcmp.ne.s16.totalorder %v6476_v4, 0  ;;  %v1541_v4 = vshll.u32 %v4779_v35, 16  ;;  %v652_v35 = vshrl.u32 %v6498_v17, 16 }
  0x3a   : > { %5555 = vmatprep.mubr.bf16.mxu0 %v6399_v28  ;;  %vm6520_vm7 = vcmp.eq.s32.totalorder %v406_v8, 0  ;;  %v6544_v40 = vsel %vm753_vm6, 0, %v6284_v37  ;;  %v6578_v62 = vsel %vm753_vm6, 0, %v6262_v26 }
  0x3b   : > { %8375 = vst [vmem:[#allocation7_spill] sm:$0xff] %v6544_v40  ;;  %vm519_vm8 = vmpackc.low %vm6520_vm7, %vm6520_vm7  ;;  %v2130_v8 = vshrl.u32 %v6578_v62, 16 }
  0x3c   : > { %5586 = vmatpush3.bf16.msra.mxu0 %v6075_v20  ;;  %5394 = vmatpush3.bf16.msra.mxu1 %v6079_v21  ;;  %v1700_v20 = vshll.u32 %v6488_v7, 16  ;;  %v2122_v21 = vshrl.u32 %v6471_v2, 16 }
  0x3d   : > { %5587 = vmatprep.subr.bf16.mxu0 %v6077_v32  ;;  %5395 = vmatprep.subr.bf16.mxu1 %v6082_v34 }
  0x3e   : > { %5364 = vmatmul.mubr.bf16.gmra.mrb[8].mxu1 %v6399_v28  ;;  %v6548_v43 = vrot.slane %v1700_v20, 1 }
  0x3f   : > { %5556 = vmatmul.mubr.bf16.gmra.mrb[8].mxu0 %v6456_v61  ;;  %5367 = vmatprep.mubr.bf16.mxu1 %v6456_v61 }
  0x40   : > { %5588 = vmatpush3.bf16.msra.mxu0 %v6077_v32  ;;  %5396 = vmatpush3.bf16.msra.mxu1 %v6082_v34  ;;  %v6527_v32 = vsel %vm753_vm6, 0, %v6274_v33  ;;  %v1535_v34 = vor.u32 %v1533_v14, %v6492_v13  ;;  %8376 = vst [vmem:[#allocation8_spill] sm:$0xff] %v6548_v43  ;;  %v203_v14 = vld [vmem:[%s6240_s11 + $0x38] sm:$0xf]  ;;  %v6601_v15 = vor.u32 %v1704_v44, %v6548_v43  ;;  %v213_v43 = vld [vmem:[%s6240_s11 + $0x60] sm:$0xf] }
  0x41   : > { %5589 = vmatprep.subr.bf16.mxu0 %v6078_v45  ;;  %5397 = vmatprep.subr.bf16.mxu1 %v6084_v48  ;;  %v1041_v47 = vshrl.u32 %v6527_v32, 16  ;;  %v235_v44 = vmax.bf16 %v6160_v3, %v203_v14 }
  0x42   : > { %5559 = vmatprep.mubr.bf16.mxu0 %v6511_v22  ;;  %v6562_v52 = vsel %vm1027_vm0, %v6402_v30, %v1535_v34  ;;  %v551_v30 = vsel %vm519_vm8, 65537, %v6160_v3  ;;  %8382 = vst [vmem:[#allocation12_spill] sm:$0xff] %v6601_v15  ;;  %v1543_v34 = vor.u32 %v1541_v4, %v6591_v6 }
  0x43   : > { %8378 = vst [vmem:[#allocation10_spill] sm:$0xff] %v6562_v52  ;;  %vm8291_vm10 = vcmp.ne.s16.totalorder %v6562_v52, 0  ;;  %v6594_v7 = vcombine.low %v551_v30, %v6316_v50  ;;  %v6641_v30 = vsel %vm754_vm14, 0, %v6313_v49 }
  0x44   : > { %5590 = vmatpush3.bf16.msra.mxu0 %v6078_v45  ;;  %5398 = vmatpush3.bf16.msra.mxu1 %v6084_v48  ;;  %v6551_v45 = vrot.slane %v2122_v21, 7  ;;  %v3253_v48 = vshrl.u32 %v6544_v40, 16  ;;  %v6589_v53 = vsel %vm8291_vm10, 0, %v6262_v26  ;;  %8388 = vst [vmem:[#allocation16_spill] sm:$0xff] %v6641_v30  ;;  %v6645_v4 = vsel %vm1027_vm0, %v6492_v13, %v1543_v34 }
  0x45   : > { %5591 = vmatprep.subr.bf16.mxu0 %v6080_v63  ;;  %5399 = vmatprep.subr.bf16.mxu1 %v6086_v0  ;;  %8381 = vst [vmem:[#allocation11_spill] sm:$0xff] %v6589_v53  ;;  %v1708_v21 = vshll.u32 %v6589_v53, 16  ;;  %v656_v36 = vshll.u32 %v6594_v7, 16  ;;  %8389 = vst [vmem:[#allocation17_spill] sm:$0xff] %v6645_v4  ;;  %v380_v34 = vadd.s32 112, %v6243_v12  ;;  %vm8290_vm2 = vcmp.ne.s16.totalorder %v6645_v4, 0 }
  0x46   : > { %5368 = vmatmul.mubr.bf16.gmra.mrb[12].mxu1 %v6511_v22  ;;  %8377 = vst [vmem:[#allocation9_spill] sm:$0xff] %v6551_v45  ;;  %v6609_v20 = vrot.slane %v3253_v48, 7  ;;  %v6628_v48 = vrot.slane %v2130_v8, 7  ;;  %v654_v8 = vor.u32 %v652_v35, %v650_v60  ;;  %v1049_v60 = vshrl.u32 %v6637_v59, 16  ;;  %v207_v35 = vld [vmem:[%s6240_s11 + $0x48] sm:$0xf] }
  0x47   : > { %v658_v11 = vrot.slane %v656_v36, 1  ;;  %v660_v10 = vshrl.u32 %v6594_v7, 16  ;;  %v381_v7 = vadd.s32 120, %v6243_v12 }
  0x48   : > { %5592 = vmatpush3.bf16.msra.mxu0 %v6080_v63  ;;  %5400 = vmatpush3.bf16.msra.mxu1 %v6086_v0  ;;  %v408_v63 = vand.u32 15, %v376_v46  ;;  %v6580_v0 = vrot.slane %v1041_v47, 7  ;;  %8385 = vst [vmem:[#allocation13_spill] sm:$0xff] %v6609_v20  ;;  %8386 = vst [vmem:[#allocation14_spill] sm:$0xff] %v6628_v48  ;;  %v6704_v27 = vrot.slane %v1049_v60, 7 }
  0x49   : > { %5593 = vmatprep.subr.bf16.mxu0 %v6081_v19  ;;  %5401 = vmatprep.subr.bf16.mxu1 %v6088_v23 }
  0x4a   : > { %vm6604_vm12 = vcmp.eq.s32.totalorder %v408_v63, 0  ;;  %v409_v63 = vand.u32 15, %v377_v31  ;;  %v379_v31 = vadd.s32 104, %v6243_v12 }
  0x4b   : > { %vm521_vm15 = vmpackc.low %vm6604_vm12, %vm6604_vm12 }
  0x4c   : > { %5594 = vmatpush3.bf16.msra.mxu0 %v6081_v19  ;;  %5402 = vmatpush3.bf16.msra.mxu1 %v6088_v23  ;;  %v204_v19 = vld [vmem:[%s6240_s11 + $0x3c] sm:$0xf]  ;;  %v6615_v23 = vsel %vm8291_vm10, 0, %v6284_v37  ;;  %v553_v14 = vsel %vm521_vm15, 65537, %v6160_v3  ;;  %vm6674_vm3 = vcmp.eq.s32.totalorder %v409_v63, 15  ;;  %v238_v63 = vmax.bf16 %v6160_v3, %v206_v16 }
  0x4d   : > { %5627 = vmatprep.subr.bf16.mxu0 %v6537_v38  ;;  %5435 = vmatprep.subr.bf16.mxu1 %v6090_v57  ;;  %v236_v46 = vmax.bf16 %v6160_v3, %v204_v19  ;;  %v2831_v54 = vshll.u32 %v6615_v23, 16  ;;  %v6633_v57 = vrot.slane %v1708_v21, 1  ;;  %v1546_v19 = vshrl.u32 %v4780_v41, 16  ;;  %vm1413_vm6 = vmpackc.low %vm6674_vm3, %vm6674_vm3 }
  0x4e   : > { %v6672_v36 = vcombine.low %v553_v14, %v6316_v50  ;;  %v659_v14 = vsel %vm623_vm13, %v654_v8, %v658_v11  ;;  %v411_v29 = vand.u32 15, %v379_v31  ;;  %v412_v21 = vand.u32 15, %v380_v34 }
  0x4f   : > { %8387 = vst [vmem:[#allocation15_spill] sm:$0xff] %v6633_v57  ;;  %v6659_v9 = vcombine.low %v235_v44, %v236_v46  ;;  %v6661_v13 = vrot.slane %v2831_v54, 1  ;;  %v237_v44 = vmax.bf16 %v6160_v3, %v205_v55  ;;  %v6687_v54 = vsel %vm8290_vm2, 0, %v6284_v37  ;;  %v208_v55 = vld [vmem:[%s6240_s11 + $0x4c] sm:$0xf] }
  0x50   : > { %8395 = vst [vmem:[#allocation19_spill] sm:$0xff] %v6687_v54  ;;  %v6695_v47 = vrot.slane %v1546_v19, 7  ;;  %v2138_v46 = vshrl.u32 %v6666_v18, 16  ;;  %v664_v16 = vshll.u32 %v6672_v36, 16  ;;  %v555_v8 = vsel %vm523_vm5, 65537, %v6160_v3 }
  0x51   : > { %356 = vst [vmem:[#allocation2 + $0x48] sm:$0xff] %v6659_v9  ;;  %5560 = vmatmul.mubr.bf16.gmra.mrb[12].mxu0 %v6659_v9  ;;  %5371 = vmatprep.mubr.bf16.mxu1 %v6659_v9  ;;  %v6702_v17 = vcombine.low %v237_v44, %v238_v63  ;;  %v239_v41 = vmax.bf16 %v6160_v3, %v207_v35  ;;  %v1716_v19 = vshll.u32 %v6687_v54, 16  ;;  %vm755_vm7 = vcmp.ne.s16.totalorder %v659_v14, 0 }
  0x52   : > { %v1551_v60 = vor.u32 %v1549_v58, %v6695_v47  ;;  %v1445_v34 = vsel %vm1413_vm6, 65537, %v6160_v3  ;;  %vm6716_vm8 = vcmp.eq.s32.totalorder %v411_v29, 15  ;;  %v240_v35 = vmax.bf16 %v6160_v3, %v208_v55 }
  0x53   : > { %357 = vst [vmem:[#allocation2 + $0x50] sm:$0xff] %v6702_v17  ;;  %5372 = vmatmul.mubr.bf16.gmra.mrb[16].mxu1 %v6702_v17  ;;  %v6721_v44 = vrot.slane %v2138_v46, 7  ;;  %v662_v63 = vor.u32 %v660_v10, %v658_v11  ;;  %v6724_v31 = vcombine.low %v555_v8, %v6316_v50  ;;  %vm6726_vm9 = vcmp.eq.s32.totalorder %v412_v21, 0  ;;  %vm1415_vm11 = vmpackc.low %vm6716_vm8, %vm6716_vm8 }
  0x54   : > { %v6732_v58 = vsel %vm755_vm7, 0, %v6284_v37  ;;  %v6736_v29 = vsel %vm755_vm7, 0, %v6399_v28  ;;  %v666_v2 = vrot.slane %v664_v16, 1  ;;  %v6738_v55 = vcombine.low %v239_v41, %v240_v35  ;;  %vm525_vm12 = vmpackc.low %vm6726_vm9, %vm6726_vm9 }
  0x55   : > { %8398 = vst [vmem:[#allocation20_spill] sm:$0xff] %v6721_v44  ;;  %8401 = vst [vmem:[#allocation21_spill] sm:$0xff] %v6736_v29  ;;  %v6743_v10 = vsel %vm755_vm7, 0, %v6313_v49  ;;  %v4781_v46 = vcombine.low %v6316_v50, %v1445_v34  ;;  %v413_v37 = vand.u32 15, %v381_v7  ;;  %v6749_v21 = vrot.slane %v1716_v19, 1 }
  0x56   : > { %8402 = vst [vmem:[#allocation22_spill] sm:$0xff] %v6743_v10  ;;  %v6753_v16 = vsel %vm1027_vm0, %v6591_v6, %v1551_v60  ;;  %v668_v8 = vshrl.u32 %v6672_v36, 16  ;;  %v382_v14 = vadd.s32 128, %v6243_v12  ;;  %358 = vst [vmem:[#allocation2 + $0x58] sm:$0xff] %v6738_v55  ;;  %5375 = vmatprep.mubr.bf16.mxu1 %v6738_v55  ;;  %v1057_v41 = vshrl.u32 %v6732_v58, 16 }
  0x57   : > { %8403 = vst [vmem:[#allocation23_spill] sm:$0xff] %v6749_v21  ;;  %8404 = vst [vmem:[#allocation24_spill] sm:$0xff] %v6753_v16  ;;  %v672_v6 = vshll.u32 %v6724_v31, 16  ;;  %v2146_v36 = vshrl.u32 %v6743_v10, 16  ;;  %v6769_v60 = vsel %vm623_vm13, %v662_v63, %v666_v2  ;;  %v1447_v34 = vsel %vm1415_vm11, 65537, %v6160_v3 }
  0x58   : > { %vm8285_vm14 = vcmp.ne.s16.totalorder %v6753_v16, 0  ;;  %v1554_v35 = vshrl.u32 %v4781_v46, 16  ;;  %v557_v11 = vsel %vm525_vm12, 65537, %v6160_v3  ;;  %vm6779_vm15 = vcmp.eq.s32.totalorder %v413_v37, 15 }
  0x59   : > { %v6786_v63 = vsel %vm8285_vm14, 0, %v6313_v49  ;;  %v670_v52 = vor.u32 %v668_v8, %v666_v2  ;;  %v414_v19 = vand.u32 15, %v382_v14  ;;  %vm756_vm1 = vcmp.ne.s16.totalorder %v6769_v60, 0  ;;  %vm1417_vm3 = vmpackc.low %vm6779_vm15, %vm6779_vm15 }
  0x5a   : > { %v674_v10 = vrot.slane %v672_v6, 1  ;;  %v4782_v18 = vcombine.low %v6316_v50, %v1447_v34  ;;  %v384_v3 = vadd.s32 144, %v6243_v12  ;;  %v6792_v37 = vrot.slane %v1057_v41, 7 }
  0x5b   : > { %v6794_v44 = vrot.slane %v2146_v36, 7  ;;  %v1557_v45 = vshll.u32 %v4781_v46, 16  ;;  %v6797_v54 = vcombine.low %v557_v11, %v6316_v50  ;;  %v8408_v2 = vshll.u32 %v6527_v32, 16 }
  0x5c   : > { %v8409_v14 = vshll.u32 %v6578_v62, 16  ;;  %v6813_v6 = vrot.slane %v1554_v35, 7  ;;  %v6818_v11 = vsel %vm756_vm1, 0, %v6313_v49  ;;  %vm6820_vm5 = vcmp.eq.s32.totalorder %v414_v19, 0 }
  0x5d   : > { %8407 = vst [vmem:[#allocation25_spill] sm:$0xff] %v6794_v44  ;;  %v6805_v8 = vor.u32 %v8408_v2, %v6580_v0  ;;  %v415_v32 = vand.u32 15, %v383_v42  ;;  %v1518_v36 = vshll.u32 %v6389_v24, 16  ;;  %v6826_v62 = vsel %vm623_vm13, %v670_v52, %v674_v10  ;;  %v6828_v2 = vld [vmem:[#allocation2 + $0x8] sm:$0xff]  ;;  %v209_v52 = vld [vmem:[%s6240_s11 + $0x50] sm:$0xf]  ;;  %vm527_vm6 = vmpackc.low %vm6820_vm5, %vm6820_vm5 }
  0x5e   : > { %v6810_v41 = vor.u32 %v8409_v14, %v6628_v48  ;;  %v1562_v34 = vshrl.u32 %v4782_v18, 16  ;;  %v1449_v35 = vsel %vm1417_vm3, 65537, %v6828_v2  ;;  %v416_v14 = vand.u32 15, %v384_v3 }
  0x5f   : > { %v6834_v19 = vsel %vm756_vm1, 0, %v6456_v61  ;;  %v676_v46 = vshrl.u32 %v6724_v31, 16  ;;  %v680_v42 = vshll.u32 %v6797_v54, 16  ;;  %v2782_v24 = vsel %vm8292_vm4, 0, %v6262_v26 }
  0x60   : > { %8410 = vst [vmem:[#allocation26_spill] sm:$0xff] %v6810_v41  ;;  %v8413_v48 = vshll.u32 %v6637_v59, 16  ;;  %v1559_v21 = vor.u32 %v1557_v45, %v6813_v6  ;;  %vm757_vm7 = vcmp.ne.s16.totalorder %v6826_v62, 0  ;;  %v6855_v26 = vcombine.low %v6316_v50, %v1449_v35  ;;  %v210_v59 = vld [vmem:[%s6240_s11 + $0x54] sm:$0xf] }
  0x61   : > { %vm6857_vm8 = vcmp.eq.s32.totalorder %v415_v32, 15  ;;  %v6865_v41 = vrot.slane %v1562_v34, 7  ;;  %v1565_v45 = vshll.u32 %v4782_v18, 16  ;;  %vm6867_vm9 = vcmp.eq.s32.totalorder %v416_v14, 0 }
  0x62   : > { %v6845_v44 = vor.u32 %v8413_v48, %v6704_v27  ;;  %v6862_v48 = vor.u32 %v1518_v36, %v6437_v51  ;;  %v2823_v3 = vshll.u32 %v2782_v24, 16  ;;  %v678_v56 = vor.u32 %v676_v46, %v674_v10  ;;  %vm1419_vm11 = vmpackc.low %vm6857_vm8, %vm6857_vm8 }
  0x63   : > { %v682_v15 = vrot.slane %v680_v42, 1  ;;  %v559_v35 = vsel %vm527_vm6, 65537, %v6828_v2  ;;  %v2827_v32 = vshrl.u32 %v2782_v24, 16  ;;  %v241_v18 = vmax.bf16 %v6828_v2, %v209_v52  ;;  %vm529_vm15 = vmpackc.low %vm6867_vm9, %vm6867_vm9 }
  0x64   : > { %8416 = vst [vmem:[#allocation27_spill] sm:$0xff] %v6862_v48  ;;  %vm1641_vm12 = vcmp.ne.s16.totalorder %v6862_v48, 0  ;;  %v2825_v51 = vrot.slane %v2823_v3, 1  ;;  %v242_v36 = vmax.bf16 %v6828_v2, %v210_v59  ;;  %v1570_v34 = vshrl.u32 %v6855_v26, 16  ;;  %v211_v3 = vld [vmem:[%s6240_s11 + $0x58] sm:$0xf] }
  0x65   : > { %v684_v10 = vshrl.u32 %v6797_v54, 16  ;;  %v2781_v46 = vsel %vm1641_vm12, 0, %v6274_v33  ;;  %v386_v14 = vadd.s32 160, %v6243_v12  ;;  %v6889_v42 = vsel %vm1027_vm0, %v6695_v47, %v1559_v21  ;;  %v212_v47 = vld [vmem:[%s6240_s11 + $0x5c] sm:$0xf] }
  0x66   : > { %8419 = vst [vmem:[#allocation28_spill] sm:$0xff] %v6889_v42  ;;  %v6894_v24 = vsel %vm757_vm7, 0, %v6399_v28  ;;  %v6897_v54 = vcombine.low %v559_v35, %v6316_v50  ;;  %v2818_v52 = vshll.u32 %v2781_v46, 16  ;;  %v6901_v33 = vor.u32 %v1565_v45, %v6865_v41  ;;  %v494_v48 = vld [vmem:[#allocation2] sm:$0x80] }
  0x67   : > { %v2816_v7 = vshrl.u32 %v2781_v46, 16  ;;  %v6904_v53 = vcombine.low %v241_v18, %v242_v36  ;;  %v6908_v21 = vsel %vm623_vm13, %v678_v56, %v682_v15  ;;  %v1451_v35 = vsel %vm1419_vm11, 65537, %v6828_v2  ;;  %v214_v36 = vld [vmem:[%s6240_s11 + $0x64] sm:$0xf] }
  0x68   : > { %8420 = vst [vmem:[#allocation29_spill] sm:$0xff] %v6908_v21  ;;  %v561_v57 = vsel %vm529_vm15, 65537, %v6828_v2  ;;  %v2829_v45 = vor.u32 %v2827_v32, %v2825_v51  ;;  %v6918_v29 = vrot.slane %v1570_v34, 7  ;;  %v6920_v46 = vor.u32 %v684_v10, %v682_v15 }
  0x69   : > { %v2820_v18 = vrot.slane %v2818_v52, 1  ;;  %359 = vst [vmem:[#allocation2 + $0x60] sm:$0xff] %v6904_v53  ;;  %v418_v56 = vand.u32 15, %v386_v14  ;;  %5376 = vmatmul.mubr.bf16.gmra.mrb[20].mxu1 %v6904_v53  ;;  %v688_v59 = vshll.u32 %v6897_v54, 16  ;;  %v243_v31 = vmax.bf16 %v6828_v2, %v211_v3 }
  0x6a   : > { %v244_v40 = vmax.bf16 %v6828_v2, %v212_v47  ;;  %v388_v32 = vadd.s32 176, %v6243_v12  ;;  %v6930_v34 = vcombine.low %v561_v57, %v6316_v50  ;;  %v2784_v10 = vsel %vm8290_vm2, 0, %v6313_v49  ;;  %v6085_v49 = vld [vmem:[%s8259_s1 + $0x188] sm:$0xff]  }
  0x6b   : > { %v2821_v15 = vor.u32 %v2820_v18, %v2816_v7  ;;  %vm450_vm3 = vcmp.eq.s32.totalorder %v418_v56, 0  ;;  %v2834_v14 = vsel %vm623_vm13, %v2829_v45, %v6661_v13  ;;  %v2835_v47 = vshrl.u32 %v6615_v23, 16  ;;  %v215_v56 = vld [vmem:[%s6240_s11 + $0x68] sm:$0xf] }
  0x6c   : > { %vm531_vm5 = vmpackc.low %vm450_vm3, %vm450_vm3  ;;  %v6937_v52 = vcombine.low %v243_v31, %v244_v40  ;;  %v420_v3 = vand.u32 15, %v388_v32  ;;  %v6941_v20 = vcombine.low %v6316_v50, %v1451_v35  ;;  %v2839_v7 = vshll.u32 %v2784_v10, 16 }
  0x6d   : > { %v2826_v57 = vsel %vm623_vm13, %v2821_v15, %v2825_v51  ;;  %v245_v18 = vmax.bf16 %v6828_v2, %v213_v43  ;;  %v563_v40 = vsel %vm531_vm5, 65537, %v6828_v2  ;;  %v2837_v51 = vor.u32 %v2835_v47, %v6661_v13  ;;  %v216_v13 = vld [vmem:[%s6240_s11 + $0x6c] sm:$0xf] }
  0x6e   : > { %5595 = vmatprep.mubr.bf16.mxu0 %v2826_v57  ;;  %360 = vst [vmem:[#allocation2 + $0x68] sm:$0xff] %v6937_v52  ;;  %vm6951_vm6 = vcmp.eq.s32.totalorder %v420_v3, 0  ;;  %v246_v35 = vmax.bf16 %v6828_v2, %v214_v36  ;;  %5379 = vmatprep.mubr.bf16.mxu1 %v6937_v52  ;;  %v692_v43 = vshrl.u32 %v6897_v54, 16  ;;  %v2841_v45 = vrot.slane %v2839_v7, 1 }
  0x6f   : > { %5596 = vmatmul.mubr.bf16.vlgmr.msra.gmra.mrb[0].mxu0 %v2834_v14  ;;  %vm533_vm8 = vmpackc.low %vm6951_vm6, %vm6951_vm6  ;;  %v390_v31 = vadd.s32 192, %v6243_v12  ;;  %v6966_v32 = vsel %vm8285_vm14, 0, %v6399_v28  ;;  %vm758_vm9 = vcmp.ne.s16.totalorder %v6908_v21, 0  ;;  %v696_v36 = vshll.u32 %v6930_v34, 16  ;;  %v6087_v14 = vld [vmem:[%s8259_s1 + $0x190] sm:$0xff]  }
  0x70   : > { %5628 = vmatpush3.bf16.msra.mxu0 %v6537_v38  ;;  %v6972_v54 = vcombine.low %v245_v18, %v246_v35  ;;  %v2843_v15 = vshrl.u32 %v2784_v10, 16  ;;  %v690_v3 = vrot.slane %v688_v59, 1  ;;  %v6978_v47 = vcombine.low %v563_v40, %v6316_v50 }
  0x71   : > { %v2842_v28 = vsel %vm623_vm13, %v2837_v51, %v2841_v45  ;;  %v422_v57 = vand.u32 15, %v390_v31  ;;  %5629 = vmatprep.subr.bf16.mxu0 %v6085_v49  ;;  %v565_v38 = vsel %vm533_vm8, 65537, %v6828_v2  ;;  %v2847_v10 = vshll.u32 %v6966_v32, 16 }
  0x72   : > { %5599 = vmatprep.mubr.bf16.mxu0 %v2842_v28  ;;  %361 = vst [vmem:[#allocation2 + $0x70] sm:$0xff] %v6972_v54  ;;  %v247_v59 = vmax.bf16 %v6828_v2, %v215_v56  ;;  %v248_v7 = vmax.bf16 %v6828_v2, %v216_v13  ;;  %5380 = vmatmul.mubr.bf16.gmra.mrb[24].mxu1 %v6972_v54  ;;  %v1578_v18 = vshrl.u32 %v6941_v20, 16  ;;  %v392_v23 = vadd.s32 208, %v6243_v12 }
  0x73   : > { %v694_v40 = vor.u32 %v692_v43, %v690_v3  ;;  %vm6993_vm11 = vcmp.eq.s32.totalorder %v422_v57, 0  ;;  %v698_v35 = vrot.slane %v696_v36, 1  ;;  %v2845_v31 = vor.u32 %v2843_v15, %v2841_v45  ;;  %v6089_v45 = vld [vmem:[%s8259_s1 + $0x198] sm:$0xff]  }
  0x74   : > { %vm535_vm15 = vmpackc.low %vm6993_vm11, %vm6993_vm11  ;;  %v7001_v56 = vrot.slane %v2847_v10, 1  ;;  %5630 = vmatpush3.bf16.msra.mxu0 %v6085_v49  ;;  %v7003_v13 = vcombine.low %v247_v59, %v248_v7  ;;  %v8425_v28 = vshrl.u32 %v6818_v11, 16  ;;  %v700_v57 = vshrl.u32 %v6930_v34, 16 }
  0x75   : > { %v704_v16 = vshll.u32 %v6978_v47, 16  ;;  %v7012_v36 = vcombine.low %v565_v38, %v6316_v50  ;;  %5631 = vmatprep.subr.bf16.mxu0 %v6087_v14  ;;  %vm1646_vm3 = vcmp.ne.s16.totalorder %v6889_v42, 0  ;;  %v1073_v49 = vshrl.u32 %v6894_v24, 16 }
  0x76   : > { %v7007_v43 = vrot.slane %v8425_v28, 7  ;;  %v7022_v15 = vsel %vm1027_vm0, %v6813_v6, %v6901_v33  ;;  %362 = vst [vmem:[#allocation2 + $0x78] sm:$0xff] %v7003_v13  ;;  %v424_v34 = vand.u32 15, %v392_v23  ;;  %5383 = vmatprep.mubr.bf16.mxu1 %v7003_v13  ;;  %v7029_v38 = vsel %vm758_vm9, 0, %v6456_v61 }
  0x77   : > { %8426 = vst [vmem:[#allocation30_spill] sm:$0xff] %v7022_v15  ;;  %v7031_v10 = vrot.slane %v1578_v18, 7  ;;  %v1581_v59 = vshll.u32 %v6941_v20, 16  ;;  %v567_v6 = vsel %vm535_vm15, 65537, %v6828_v2  ;;  %v8427_v33 = vshll.u32 %v6855_v26, 16  ;;  %v6091_v26 = vld [vmem:[%s8259_s1 + $0x1a0] sm:$0xff]  }
  0x78   : > { %v7045_v23 = vsel %vm623_vm13, %v6920_v46, %v690_v3  ;;  %v7048_v18 = vsel %vm623_vm13, %v694_v40, %v698_v35  ;;  %v2850_v20 = vsel %vm623_vm13, %v2845_v31, %v7001_v56  ;;  %5632 = vmatpush3.bf16.msra.mxu0 %v6087_v14  ;;  %v702_v28 = vor.u32 %v700_v57, %v698_v35 }
  0x79   : > { %v1575_v7 = vor.u32 %v8427_v33, %v6918_v29  ;;  %8428 = vst [vmem:[#allocation31_spill] sm:$0xff] %v7045_v23  ;;  %8429 = vst [vmem:[#allocation32_spill] sm:$0xff] %v7048_v18  ;;  %v706_v4 = vrot.slane %v704_v16, 1  ;;  %v708_v51 = vshrl.u32 %v6978_v47, 16  ;;  %v712_v21 = vshll.u32 %v7012_v36, 16  ;;  %5600 = vmatmul.mubr.bf16.gmra.mrb[4].mxu0 %v2850_v20  ;;  %5633 = vmatprep.subr.bf16.mxu0 %v6089_v45  ;;  %v6093_v33 = vld [vmem:[%s8259_s1 + $0x1a8] sm:$0xff]  }
  0x7a   : > { %v1081_v3 = vshrl.u32 %v7029_v38, 16  ;;  %v7060_v40 = vcombine.low %v567_v6, %v6316_v50  ;;  %vm7062_vm5 = vcmp.eq.s32.totalorder %v424_v34, 0  ;;  %v7066_v14 = vrot.slane %v1073_v49, 7  ;;  %v218_v20 = vld [vmem:[%s6240_s11 + $0x74] sm:$0xf] }
  0x7b   : > { %vm8337_vm6 = vcmp.ne.s16.totalorder %v7022_v15, 0  ;;  %v1583_v35 = vor.u32 %v1581_v59, %v7031_v10  ;;  %v8432_v31 = vshll.u32 %v6732_v58, 16  ;;  %v7078_v6 = vsel %vm1027_vm0, %v6865_v41, %v1575_v7  ;;  %vm537_vm15 = vmpackc.low %vm7062_vm5, %vm7062_vm5  ;;  %v217_v41 = vld [vmem:[%s6240_s11 + $0x70] sm:$0xf] }
  0x7c   : > { %8433 = vst [vmem:[#allocation33_spill] sm:$0xff] %v7078_v6  ;;  %vm8316_vm8 = vcmp.ne.s16.totalorder %v7045_v23, 0  ;;  %vm8315_vm11 = vcmp.ne.s16.totalorder %v7048_v18, 0  ;;  %5634 = vmatpush3.bf16.msra.mxu0 %v6089_v45  ;;  %v7083_v49 = vsel %vm623_vm13, %v702_v28, %v706_v4  ;;  %v710_v34 = vor.u32 %v708_v51, %v706_v4  ;;  %v219_v23 = vld [vmem:[%s6240_s11 + $0x78] sm:$0xf] }
  0x7d   : > { %v7074_v57 = vor.u32 %v8432_v31, %v6792_v37  ;;  %8434 = vst [vmem:[#allocation34_spill] sm:$0xff] %v7083_v49  ;;  %v714_v59 = vrot.slane %v712_v21, 1  ;;  %v2786_v58 = vsel %vm1646_vm3, 0, %v6456_v61  ;;  %5635 = vmatprep.subr.bf16.mxu0 %v6091_v26  ;;  %v7095_v45 = vrot.slane %v1081_v3, 7 }
  0x7e   : > { %v716_v7 = vshrl.u32 %v7012_v36, 16  ;;  %v720_v4 = vshll.u32 %v7060_v40, 16  ;;  %v2851_v21 = vshrl.u32 %v6966_v32, 16  ;;  %vm8324_vm5 = vcmp.ne.s16.totalorder %v7078_v6, 0 }
  0x7f   : > { %v7105_v61 = vsel %vm8316_vm8, 0, %v6511_v22  ;;  %v7109_v28 = vsel %vm1027_vm0, %v6918_v29, %v1583_v35  ;;  %v7114_v36 = vsel %vm8315_vm11, 0, %v6659_v9  ;;  %vm8306_vm14 = vcmp.ne.s16.totalorder %v7083_v49, 0 }
  0x80   : > { %8435 = vst [vmem:[#allocation35_spill] sm:$0xff] %v7109_v28  ;;  %v569_v32 = vsel %vm537_vm15, 65537, %v6828_v2  ;;  %v2853_v51 = vor.u32 %v2851_v21, %v7001_v56  ;;  %v2855_v3 = vshll.u32 %v2786_v58, 16  ;;  %5636 = vmatpush3.bf16.msra.mxu0 %v6091_v26  ;;  %v7120_v16 = vsel %vm623_vm13, %v710_v34, %v714_v59  ;;  %v6095_v26 = vld [vmem:[%s8259_s1 + $0x1b0] sm:$0xff]  }
  0x81   : > { %8436 = vst [vmem:[#allocation36_spill] sm:$0xff] %v7120_v16  ;;  %v249_v29 = vmax.bf16 %v6828_v2, %v217_v41  ;;  %v250_v35 = vmax.bf16 %v6828_v2, %v218_v20  ;;  %v394_v31 = vadd.s32 224, %v6243_v12  ;;  %5637 = vmatprep.subr.bf16.mxu0 %v6093_v33  ;;  %v718_v47 = vor.u32 %v716_v7, %v714_v59 }
  0x82   : > { %v722_v46 = vrot.slane %v720_v4, 1  ;;  %v2857_v18 = vrot.slane %v2855_v3, 1  ;;  %v2787_v56 = vsel %vm8337_vm6, 0, %v6511_v22  ;;  %v7132_v34 = vcombine.low %v569_v32, %v6316_v50 }
  0x83   : > { %v7134_v41 = vcombine.low %v249_v29, %v250_v35  ;;  %v426_v21 = vand.u32 15, %v394_v31  ;;  %v2859_v20 = vshrl.u32 %v2786_v58, 16  ;;  %v1089_v59 = vshrl.u32 %v7105_v61, 16  ;;  %v220_v29 = vld [vmem:[%s6240_s11 + $0x7c] sm:$0xf] }
  0x84   : > { %v7141_v7 = vsel %vm8306_vm14, 0, %v6702_v17  ;;  %v2858_v22 = vsel %vm623_vm13, %v2853_v51, %v2857_v18  ;;  %v2863_v4 = vshll.u32 %v2787_v56, 16  ;;  %5638 = vmatpush3.bf16.msra.mxu0 %v6093_v33  ;;  %vm8318_vm15 = vcmp.ne.s16.totalorder %v7109_v28, 0  ;;  %v6097_v51 = vld [vmem:[%s8259_s1 + $0x1b8] sm:$0xff]  }
  0x85   : > { %5603 = vmatprep.mubr.bf16.mxu0 %v2858_v22  ;;  %363 = vst [vmem:[#allocation2 + $0x80] sm:$0xff] %v7134_v41  ;;  %vm7147_vm2 = vcmp.eq.s32.totalorder %v426_v21, 0  ;;  %v2861_v3 = vor.u32 %v2859_v20, %v2857_v18  ;;  %5384 = vmatmul.mubr.bf16.gmra.mrb[28].mxu1 %v7134_v41  ;;  %v1097_v33 = vshrl.u32 %v7114_v36, 16  ;;  %vm8305_vm10 = vcmp.ne.s16.totalorder %v7120_v16, 0 }
  0x86   : > { %vm539_vm4 = vmpackc.low %vm7147_vm2, %vm7147_vm2  ;;  %v2865_v35 = vrot.slane %v2863_v4, 1  ;;  %v251_v31 = vmax.bf16 %v6828_v2, %v219_v23  ;;  %5639 = vmatprep.subr.bf16.mxu0 %v6095_v26  ;;  %v1105_v18 = vshrl.u32 %v7141_v7, 16  ;;  %v7164_v21 = vsel %vm623_vm13, %v718_v47, %v722_v46 }
  0x87   : > { %8439 = vst [vmem:[#allocation37_spill] sm:$0xff] %v7164_v21  ;;  %v724_v20 = vshrl.u32 %v7060_v40, 16  ;;  %v728_v22 = vshll.u32 %v7132_v34, 16  ;;  %v571_v32 = vsel %vm539_vm4, 65537, %v6828_v2  ;;  %v252_v58 = vmax.bf16 %v6828_v2, %v220_v29 }
  0x88   : > { %v2866_v49 = vsel %vm623_vm13, %v2861_v3, %v2865_v35  ;;  %v396_v4 = vadd.s32 240, %v6243_v12  ;;  %5640 = vmatpush3.bf16.msra.mxu0 %v6095_v26  ;;  %v7175_v23 = vsel %vm8305_vm10, 0, %v6738_v55  ;;  %v7178_v47 = vcombine.low %v571_v32, %v6316_v50  ;;  %v7186_v3 = vld [vmem:[%s8259_s1 + $0x1c0] sm:$0xff]  }
  0x89   : > { %5604 = vmatmul.mubr.bf16.gmra.mrb[8].mxu0 %v2866_v49  ;;  %v2788_v40 = vsel %vm8324_vm5, 0, %v6659_v9  ;;  %v2867_v30 = vshrl.u32 %v2787_v56, 16  ;;  %5641 = vmatprep.subr.bf16.mxu0 %v6097_v51  ;;  %8440 = vst [vmem:[#allocation38_spill] sm:$0xff] %v7186_v3  ;;  %v7188_v26 = vcombine.low %v251_v31, %v252_v58  ;;  %v7193_v32 = vsel %vm8318_vm15, 0, %v6702_v17 }
  0x8a   : > { %v428_v29 = vand.u32 15, %v396_v4  ;;  %v2871_v16 = vshll.u32 %v2788_v40, 16  ;;  %vm8312_vm4 = vcmp.ne.s16.totalorder %v7164_v21, 0  ;;  %v726_v49 = vor.u32 %v724_v20, %v722_v46 }
  0x8b   : > { %v730_v9 = vrot.slane %v728_v22, 1  ;;  %v2869_v56 = vor.u32 %v2867_v30, %v2865_v35  ;;  %364 = vst [vmem:[#allocation2 + $0x88] sm:$0xff] %v7188_v26  ;;  %v2875_v58 = vshrl.u32 %v2788_v40, 16  ;;  %v2879_v4 = vshll.u32 %v7193_v32, 16 }
  0x8c   : > { %vm7197_vm2 = vcmp.eq.s32.totalorder %v428_v29, 0  ;;  %v2873_v31 = vrot.slane %v2871_v16, 1  ;;  %5642 = vmatpush3.bf16.msra.mxu0 %v6097_v51  ;;  %v732_v17 = vshrl.u32 %v7132_v34, 16  ;;  %v736_v28 = vshll.u32 %v7178_v47, 16 }
  0x8d   : > { %vm541_vm10 = vmpackc.low %vm7197_vm2, %vm7197_vm2  ;;  %vm8320_vm14 = vcmp.ne.s16.totalorder %v6357_v5, 0  ;;  %v385_v30 = vadd.s32 152, %v6243_v12  ;;  %5675 = vmatprep.subr.bf16.mxu0 %v7186_v3  ;;  %v780_v46 = vsel %vm8312_vm4, 0, %v6904_v53  ;;  %v7214_v34 = vrot.slane %v2879_v4, 1  ;;  %v8487_v5 = vld [vmem:[#allocation15_spill] sm:$0xff] }
  0x8e   : > { %v2874_v16 = vsel %vm623_vm13, %v2869_v56, %v2873_v31  ;;  %v2877_v51 = vor.u32 %v2875_v58, %v2873_v31  ;;  %v7216_v35 = vrot.slane %v1089_v59, 7  ;;  %v1113_v6 = vshrl.u32 %v7175_v23, 16 }
  0x8f   : > { %v573_v20 = vsel %vm541_vm10, 65537, %v6828_v2  ;;  %5607 = vmatprep.mubr.bf16.mxu0 %v2874_v16  ;;  %v768_v22 = vsel %vm8320_vm14, 0, %v494_v48  ;;  %v1100_v40 = vshll.u32 %v7114_v36, 16  ;;  %v417_v56 = vand.u32 15, %v385_v30 }
  0x90   : > { %v2882_v29 = vsel %vm623_vm13, %v2877_v51, %v7214_v34  ;;  %v1029_v21 = vshrl.u32 %v768_v22, 16  ;;  %v1121_v31 = vshrl.u32 %v780_v46, 16  ;;  %v7226_v58 = vsel %vm623_vm13, %v726_v49, %v730_v9 }
  0x91   : > { %v734_v59 = vor.u32 %v732_v17, %v730_v9  ;;  %v738_v4 = vrot.slane %v736_v28, 1  ;;  %5608 = vmatmul.mubr.bf16.gmra.mrb[12].mxu0 %v2882_v29  ;;  %v7228_v3 = vrot.slane %v1097_v33, 7  ;;  %v7230_v16 = vrot.slane %v1105_v18, 7  ;;  %v6092_v9 = vld [vmem:[%s8259_s1 + $0x88] sm:$0xff]  }
  0x92   : > { %v1108_v48 = vshll.u32 %v7141_v7, 16  ;;  %v7234_v36 = vcombine.low %v573_v20, %v6316_v50  ;;  %v7236_v15 = vrot.slane %v1113_v6, 7  ;;  %v1116_v30 = vshll.u32 %v7175_v23, 16 }
  0x93   : > { %v1031_v51 = vrot.slane %v1029_v21, 7  ;;  %vm481_vm10 = vcmp.eq.s32.totalorder %v417_v56, 15  ;;  %v1124_v49 = vshll.u32 %v780_v46, 16  ;;  %vm8313_vm2 = vcmp.ne.s16.totalorder %v7226_v58, 0 }
  0x94   : > { %vm1421_vm4 = vmpackc.low %vm481_vm10, %vm481_vm10  ;;  %v1047_v28 = vsel %vm1027_vm0, %v6517_v25, %v6805_v8  ;;  %v387_v33 = vadd.s32 168, %v6243_v12  ;;  %v7244_v7 = vrot.slane %v1121_v31, 7  ;;  %v7247_v18 = vsel %vm623_vm13, %v734_v59, %v738_v4 }
  0x95   : > { %v1039_v23 = vsel %vm1027_vm0, %v1031_v51, %v6517_v25  ;;  %v1453_v21 = vsel %vm1421_vm4, 65537, %v6828_v2  ;;  %v8443_v17 = vshll.u32 %v6818_v11, 16  ;;  %v740_v46 = vshrl.u32 %v7178_v47, 16  ;;  %v6127_v51 = vld [vmem:[%s8259_s1 + $0x80] sm:$0xff]  }
  0x96   : > { %v744_v6 = vshll.u32 %v7234_v36, 16  ;;  %5403 = vmatprep.mubr.bf16.mxu1 %v1039_v23  ;;  %v4785_v20 = vcombine.low %v6316_v50, %v1453_v21  ;;  %v8444_v25 = vshll.u32 %v6894_v24, 16  ;;  %v8445_v29 = vshll.u32 %v7029_v38, 16 }
  0x97   : > { %v1070_v8 = vor.u32 %v8443_v17, %v7007_v43  ;;  %v7272_v11 = vsel %vm8313_vm2, 0, %v6937_v52  ;;  %5404 = vmatmul.mubr.bf16.vlgmr.msra.gmra.mrb[0].mxu1 %v1047_v28  ;;  %v419_v47 = vand.u32 15, %v387_v33  ;;  %v8446_v31 = vshll.u32 %v7105_v61, 16 }
  0x98   : > { %v1078_v22 = vor.u32 %v8444_v25, %v7066_v14  ;;  %v7267_v56 = vor.u32 %v8445_v29, %v7095_v45  ;;  %v7280_v24 = vor.u32 %v1100_v40, %v7228_v3  ;;  %vm8314_vm4 = vcmp.ne.s16.totalorder %v7247_v18, 0  ;;  %5436 = vmatpush3.bf16.msra.mxu1 %v6127_v51 }
  0x99   : > { %v7277_v59 = vor.u32 %v8446_v31, %v7216_v35  ;;  %v2883_v38 = vshrl.u32 %v7193_v32, 16  ;;  %v7288_v28 = vor.u32 %v1108_v48, %v7230_v16  ;;  %v7291_v33 = vor.u32 %v1116_v30, %v7236_v15  ;;  %5437 = vmatprep.subr.bf16.mxu1 %v6092_v9  ;;  %v6094_v32 = vld [vmem:[%s8259_s1 + $0x90] sm:$0xff]  }
  0x9a   : > { %v7294_v61 = vor.u32 %v1124_v49, %v7244_v7  ;;  %v1586_v40 = vshrl.u32 %v4785_v20, 16  ;;  %v1129_v23 = vshrl.u32 %v7272_v11, 16  ;;  %v1132_v21 = vshll.u32 %v7272_v11, 16 }
  0x9b   : > { %v742_v17 = vor.u32 %v740_v46, %v738_v4  ;;  %v7301_v25 = vrot.slane %v744_v6, 1  ;;  %v7306_v48 = vsel %vm8314_vm4, 0, %v6972_v54  ;;  %v1589_v49 = vshll.u32 %v4785_v20, 16 }
  0x9c   : > { %v1588_v30 = vrot.slane %v1586_v40, 7  ;;  %vm483_vm10 = vcmp.eq.s32.totalorder %v419_v47, 15  ;;  %v748_v29 = vshrl.u32 %v7234_v36, 16  ;;  %v2885_v31 = vor.u32 %v2883_v38, %v7214_v34  ;;  %5438 = vmatpush3.bf16.msra.mxu1 %v6092_v9  ;;  %v6096_v34 = vld [vmem:[%s8259_s1 + $0x98] sm:$0xff]  }
  0x9d   : > { %vm1423_vm2 = vmpackc.low %vm483_vm10, %vm483_vm10  ;;  %v1055_v51 = vsel %vm1027_vm0, %v6580_v0, %v6845_v44  ;;  %v389_v4 = vadd.s32 184, %v6243_v12  ;;  %v1063_v20 = vsel %vm1027_vm0, %v6704_v27, %v7074_v57  ;;  %v391_v47 = vadd.s32 200, %v6243_v12  ;;  %5439 = vmatprep.subr.bf16.mxu1 %v6094_v32 }
  0x9e   : > { %v1591_v46 = vor.u32 %v1589_v49, %v1588_v30  ;;  %v1455_v6 = vsel %vm1423_vm2, 65537, %v6828_v2  ;;  %5407 = vmatprep.mubr.bf16.mxu1 %v1055_v51  ;;  %v7324_v0 = vsel %vm623_vm13, %v742_v17, %v7301_v25  ;;  %v1071_v38 = vsel %vm1027_vm0, %v6792_v37, %v1070_v8 }
  0x9f   : > { %v4786_v44 = vcombine.low %v6316_v50, %v1455_v6  ;;  %v421_v9 = vand.u32 15, %v389_v4  ;;  %5408 = vmatmul.mubr.bf16.gmra.mrb[4].mxu1 %v1063_v20  ;;  %v423_v57 = vand.u32 15, %v391_v47  ;;  %v393_v40 = vadd.s32 216, %v6243_v12 }
  0xa0   : > { %v7331_v27 = vsel %vm1027_vm0, %v7031_v10, %v1591_v46  ;;  %v1079_v49 = vsel %vm1027_vm0, %v7007_v43, %v1078_v22  ;;  %5411 = vmatprep.mubr.bf16.mxu1 %v1071_v38  ;;  %5440 = vmatpush3.bf16.msra.mxu1 %v6094_v32  ;;  %v395_v8 = vadd.s32 232, %v6243_v12  ;;  %v6098_v43 = vld [vmem:[%s8259_s1 + $0xa0] sm:$0xff]   ;;  %v1087_v38 = vsel %vm1027_vm0, %v7066_v14, %v7267_v56 }
  0xa1   : > { %vm8317_vm2 = vcmp.ne.s16.totalorder %v7331_v27, 0  ;;  %v1594_v17 = vshrl.u32 %v4786_v44, 16  ;;  %v1597_v51 = vshll.u32 %v4786_v44, 16  ;;  %vm485_vm10 = vcmp.eq.s32.totalorder %v421_v9, 15  ;;  %5441 = vmatprep.subr.bf16.mxu1 %v6096_v34 }
  0xa2   : > { %v2790_v37 = vsel %vm8317_vm2, 0, %v6738_v55  ;;  %vm1425_vm4 = vmpackc.low %vm485_vm10, %vm485_vm10  ;;  %vm487_vm11 = vcmp.eq.s32.totalorder %v423_v57, 15  ;;  %v425_v10 = vand.u32 15, %v393_v40  ;;  %v427_v20 = vand.u32 15, %v395_v8 }
  0xa3   : > { %v2887_v22 = vshll.u32 %v2790_v37, 16  ;;  %v1596_v4 = vrot.slane %v1594_v17, 7  ;;  %v2891_v46 = vshrl.u32 %v2790_v37, 16  ;;  %v1457_v6 = vsel %vm1425_vm4, 65537, %v6828_v2  ;;  %vm1427_vm8 = vmpackc.low %vm487_vm11, %vm487_vm11 }
  0xa4   : > { %v4787_v32 = vcombine.low %v6316_v50, %v1457_v6  ;;  %v1459_v55 = vsel %vm1427_vm8, 65537, %v6828_v2  ;;  %vm489_vm10 = vcmp.eq.s32.totalorder %v425_v10, 15  ;;  %5442 = vmatpush3.bf16.msra.mxu1 %v6096_v34  ;;  %vm766_vm15 = vcmp.ne.s16.totalorder %v7324_v0, 0  ;;  %v6109_v0 = vld [vmem:[%s8259_s1 + $0x1e8] sm:$0xff]  }
  0xa5   : > { %v2889_v47 = vrot.slane %v2887_v22, 1  ;;  %v1599_v44 = vor.u32 %v1597_v51, %v1596_v4  ;;  %v4788_v9 = vcombine.low %v6316_v50, %v1459_v55  ;;  %vm1429_vm2 = vmpackc.low %vm489_vm10, %vm489_vm10  ;;  %vm7353_vm11 = vcmp.eq.s32.totalorder %v427_v20, 15  ;;  %5443 = vmatprep.subr.bf16.mxu1 %v6098_v43  ;;  %v6100_v51 = vld [vmem:[%s8259_s1 + $0xa8] sm:$0xff]  }
  0xa6   : > { %v1602_v57 = vshrl.u32 %v4787_v32, 16  ;;  %v1605_v40 = vshll.u32 %v4787_v32, 16  ;;  %v1461_v17 = vsel %vm1429_vm2, 65537, %v6828_v2  ;;  %vm1431_vm8 = vmpackc.low %vm7353_vm11, %vm7353_vm11  ;;  %v397_v32 = vadd.s32 248, %v6243_v12 }
  0xa7   : > { %v2890_v10 = vsel %vm623_vm13, %v2885_v31, %v2889_v47  ;;  %v7362_v14 = vsel %vm1027_vm0, %v1588_v30, %v1599_v44  ;;  %v2893_v56 = vor.u32 %v2891_v46, %v2889_v47  ;;  %v1610_v34 = vshrl.u32 %v4788_v9, 16  ;;  %5412 = vmatmul.mubr.bf16.gmra.mrb[8].mxu1 %v1079_v49  ;;  %v6102_v49 = vld [vmem:[%s8259_s1 + $0xb0] sm:$0xff]  }
  0xa8   : > { %5611 = vmatprep.mubr.bf16.mxu0 %v2890_v10  ;;  %vm1651_vm4 = vcmp.ne.s16.totalorder %v7362_v14, 0  ;;  %v1604_v8 = vrot.slane %v1602_v57, 7  ;;  %v1613_v22 = vshll.u32 %v4788_v9, 16  ;;  %v4789_v6 = vcombine.low %v6316_v50, %v1461_v17  ;;  %5415 = vmatprep.mubr.bf16.mxu1 %v1087_v38 }
  0xa9   : > { %v2791_v31 = vsel %vm1651_vm4, 0, %v6904_v53  ;;  %v1612_v30 = vrot.slane %v1610_v34, 7  ;;  %v1463_v46 = vsel %vm1431_vm8, 65537, %v6828_v2  ;;  %5444 = vmatpush3.bf16.msra.mxu1 %v6098_v43  ;;  %v429_v17 = vand.u32 15, %v397_v32 }
  0xaa   : > { %v2895_v55 = vshll.u32 %v2791_v31, 16  ;;  %v1607_v20 = vor.u32 %v1605_v40, %v1604_v8  ;;  %v2899_v47 = vshrl.u32 %v2791_v31, 16  ;;  %v1618_v44 = vshrl.u32 %v4789_v6, 16  ;;  %5445 = vmatprep.subr.bf16.mxu1 %v6100_v51 }
  0xab   : > { %v1615_v9 = vor.u32 %v1613_v22, %v1612_v30  ;;  %v1621_v57 = vshll.u32 %v4789_v6, 16  ;;  %v4790_v53 = vcombine.low %v6316_v50, %v1463_v46  ;;  %v1095_v43 = vsel %vm1027_vm0, %v7095_v45, %v7277_v59  ;;  %v6104_v45 = vld [vmem:[%s8259_s1 + $0xb8] sm:$0xff]  }
  0xac   : > { %v2897_v37 = vrot.slane %v2895_v55, 1  ;;  %v7379_v38 = vsel %vm1027_vm0, %v1596_v4, %v1607_v20  ;;  %v1620_v10 = vrot.slane %v1618_v44, 7  ;;  %vm493_vm11 = vcmp.eq.s32.totalorder %v429_v17, 15 }
  0xad   : > { %8449 = vst [vmem:[#allocation39_spill] sm:$0xff] %v7379_v38  ;;  %vm1652_vm2 = vcmp.ne.s16.totalorder %v7379_v38, 0  ;;  %v7386_v40 = vsel %vm1027_vm0, %v1604_v8, %v1615_v9  ;;  %v1626_v34 = vshrl.u32 %v4790_v53, 16  ;;  %v1629_v22 = vshll.u32 %v4790_v53, 16  ;;  %5446 = vmatpush3.bf16.msra.mxu1 %v6100_v51  ;;  %vm1433_vm8 = vmpackc.low %vm493_vm11, %vm493_vm11  ;;  %v7415_v53 = vld [vmem:[%s8259_s1 + $0xc0] sm:$0xff]  }
  0xae   : > { %8450 = vst [vmem:[#allocation40_spill] sm:$0xff] %v7386_v40  ;;  %v2898_v6 = vsel %vm623_vm13, %v2893_v56, %v2897_v37  ;;  %v2792_v4 = vsel %vm1652_vm2, 0, %v6937_v52  ;;  %v2901_v31 = vor.u32 %v2899_v47, %v2897_v37  ;;  %vm8319_vm10 = vcmp.ne.s16.totalorder %v7386_v40, 0  ;;  %5447 = vmatprep.subr.bf16.mxu1 %v6102_v49  ;;  %v8503_v40 = vld [vmem:[#allocation23_spill] sm:$0xff] }
  0xaf   : > { %5612 = vmatmul.mubr.bf16.gmra.mrb[16].mxu0 %v2898_v6  ;;  %v2903_v59 = vshll.u32 %v2792_v4, 16  ;;  %v2793_v51 = vsel %vm8319_vm10, 0, %v6972_v54  ;;  %v2907_v8 = vshrl.u32 %v2792_v4, 16  ;;  %v1623_v56 = vor.u32 %v1621_v57, %v1620_v10  ;;  %5416 = vmatmul.mubr.bf16.gmra.mrb[12].mxu1 %v1095_v43  ;;  %v3204_v4 = vld [vmem:[#allocation2 + $0x10] sm:$0x80] }
  0xb0   : > { %v2911_v46 = vshll.u32 %v2793_v51, 16  ;;  %v2915_v32 = vshrl.u32 %v2793_v51, 16  ;;  %v1628_v55 = vrot.slane %v1626_v34, 7  ;;  %v7402_v52 = vsel %vm766_vm15, 0, %v7003_v13 }
  0xb1   : > { %v2905_v20 = vrot.slane %v2903_v59, 1  ;;  %v7405_v47 = vsel %vm1027_vm0, %v1612_v30, %v1623_v56  ;;  %v1103_v54 = vsel %vm1027_vm0, %v7216_v35, %v7280_v24  ;;  %5448 = vmatpush3.bf16.msra.mxu1 %v6102_v49  ;;  %v1465_v57 = vsel %vm1433_vm8, 65537, %v6828_v2 }
  0xb2   : > { %8451 = vst [vmem:[#allocation41_spill] sm:$0xff] %v7405_v47  ;;  %v2913_v44 = vrot.slane %v2911_v46, 1  ;;  %vm1654_vm10 = vcmp.ne.s16.totalorder %v7405_v47, 0  ;;  %v1631_v9 = vor.u32 %v1629_v22, %v1628_v55  ;;  %5419 = vmatprep.mubr.bf16.mxu1 %v1103_v54  ;;  %5449 = vmatprep.subr.bf16.mxu1 %v6104_v45  ;;  %v4791_v24 = vcombine.low %v6316_v50, %v1465_v57 }
  0xb3   : > { %v2906_v30 = vsel %vm623_vm13, %v2901_v31, %v2905_v20  ;;  %v2909_v17 = vor.u32 %v2907_v8, %v2905_v20  ;;  %v2794_v35 = vsel %vm1654_vm10, 0, %v7003_v13  ;;  %v7429_v31 = vrot.slane %v1129_v23, 7  ;;  %v2780_v23 = vld [vmem:[#allocation2 + $0x90] sm:$0x1] }
  0xb4   : > { %5615 = vmatprep.mubr.bf16.mxu0 %v2906_v30  ;;  %v2917_v49 = vor.u32 %v2915_v32, %v2913_v44  ;;  %v2919_v37 = vshll.u32 %v2794_v35, 16  ;;  %v7423_v2 = vsel %vm1027_vm0, %v1620_v10, %v1631_v9  ;;  %v2923_v43 = vshrl.u32 %v2794_v35, 16 }
  0xb5   : > { %8452 = vst [vmem:[#allocation42_spill] sm:$0xff] %v7423_v2  ;;  %v2914_v34 = vsel %vm623_vm13, %v2909_v17, %v2913_v44  ;;  %vm1655_vm11 = vcmp.ne.s16.totalorder %v7423_v2, 0  ;;  %v1634_v22 = vshrl.u32 %v4791_v24, 16  ;;  %v1637_v6 = vshll.u32 %v4791_v24, 16  ;;  %5450 = vmatpush3.bf16.msra.mxu1 %v6104_v45 }
  0xb6   : > { %v1137_v50 = vshrl.u32 %v7306_v48, 16  ;;  %v2921_v59 = vrot.slane %v2919_v37, 1  ;;  %v2795_v10 = vsel %vm1655_vm11, 0, %v7134_v41  ;;  %5483 = vmatprep.subr.bf16.mxu1 %v7415_v53  ;;  %v7439_v51 = vor.u32 %v748_v29, %v7301_v25 }
  0xb7   : > { %5616 = vmatmul.mubr.bf16.gmra.mrb[20].mxu0 %v2914_v34  ;;  %v2927_v45 = vshll.u32 %v2795_v10, 16  ;;  %v7441_v8 = vrot.slane %v1634_v22, 7  ;;  %v1111_v56 = vsel %vm1027_vm0, %v7228_v3, %v7288_v28  ;;  %v1145_v46 = vshrl.u32 %v7402_v52, 16  ;;  %v7455_v3 = vld [vmem:[#allocation2 + $0x30] sm:$0xff] }
  0xb8   : > { %v2922_v32 = vsel %vm623_vm13, %v2917_v49, %v2921_v59  ;;  %v2925_v20 = vor.u32 %v2923_v43, %v2921_v59  ;;  %v3206_v54 = vsel %vm8320_vm14, 0, %v3204_v4  ;;  %5420 = vmatmul.mubr.bf16.gmra.mrb[16].mxu1 %v1111_v56  ;;  %v1119_v29 = vsel %vm1027_vm0, %v7230_v16, %v7291_v33  ;;  %8454 = vst [vmem:[#allocation44_spill] sm:$0xff] %v7455_v3 }
  0xb9   : > { %8453 = vst [vmem:[#allocation43_spill] sm:$0xff] %v7441_v8  ;;  %5619 = vmatprep.mubr.bf16.mxu0 %v2922_v32  ;;  %v2929_v36 = vrot.slane %v2927_v45, 1  ;;  %v1639_v25 = vor.u32 %v1637_v6, %v7441_v8  ;;  %vm1657_vm8 = vcmp.ne.s16.totalorder %v7441_v8, 0  ;;  %v7460_v28 = vsel %vm756_vm1, 0, %v7455_v3  ;;  %5423 = vmatprep.mubr.bf16.mxu1 %v1119_v29  ;;  %v7514_v29 = vld [vmem:[#allocation2 + $0x40] sm:$0xff] }
  0xba   : > { %v1134_v44 = vor.u32 %v1132_v21, %v7429_v31  ;;  %v2931_v9 = vshrl.u32 %v2795_v10, 16  ;;  %v2797_v57 = vsel %vm1657_vm8, 0, %v2780_v23  ;;  %v1139_v30 = vrot.slane %v1137_v50, 7  ;;  %v7503_v23 = vld [vmem:[#allocation2 + $0x38] sm:$0xff]  ;;  %8459 = vst [vmem:[#allocation47_spill] sm:$0xff] %v7514_v29  ;;  %v8488_v8 = vld [vmem:[#allocation11_spill] sm:$0xff] }
  0xbb   : > { %v1140_v17 = vshll.u32 %v7306_v48, 16  ;;  %vm767_vm14 = vcmp.ne.s16.totalorder %v7439_v51, 0  ;;  %v7470_v16 = vsel %vm1027_vm0, %v1628_v55, %v1639_v25  ;;  %v2930_v60 = vsel %vm623_vm13, %v2925_v20, %v2929_v36  ;;  %8458 = vst [vmem:[#allocation46_spill] sm:$0xff] %v7503_v23 }
  0xbc   : > { %8455 = vst [vmem:[#allocation45_spill] sm:$0xff] %v7470_v16  ;;  %vm1656_vm1 = vcmp.ne.s16.totalorder %v7470_v16, 0  ;;  %v2943_v33 = vshll.u32 %v2797_v57, 16  ;;  %v3241_v11 = vshrl.u32 %v3206_v54, 16  ;;  %v7474_v21 = vrot.slane %v1145_v46, 7 }
  0xbd   : > { %v1148_v35 = vshll.u32 %v7402_v52, 16  ;;  %v2796_v24 = vsel %vm1656_vm1, 0, %v7188_v26  ;;  %v1127_v48 = vsel %vm1027_vm0, %v7236_v15, %v7294_v61  ;;  %v2933_v55 = vor.u32 %v2931_v9, %v2929_v36  ;;  %v8475_v52 = vld [vmem:[#allocation21_spill] sm:$0xff] }
  0xbe   : > { %v2935_v49 = vshll.u32 %v2796_v24, 16  ;;  %v2939_v37 = vshrl.u32 %v2796_v24, 16  ;;  %v1135_v43 = vsel %vm1027_vm0, %v7244_v7, %v1134_v44  ;;  %v8456_v34 = vshll.u32 %v6786_v63, 16  ;;  %v8463_v24 = vld [vmem:[#allocation16_spill] sm:$0xff]  ;;  %v7602_v9 = vld [vmem:[#allocation2 + $0x50] sm:$0xff] }
  0xbf   : > { %v7493_v6 = vsel %vm1646_vm3, 0, %v7455_v3  ;;  %v784_v15 = vsel %vm767_vm14, 0, %v7134_v41  ;;  %5620 = vmatmul.mubr.bf16.gmra.mrb[24].mxu0 %v2930_v60  ;;  %v2945_v4 = vrot.slane %v2943_v33, 1  ;;  %v3243_v50 = vrot.slane %v3241_v11, 7  ;;  %v7529_v11 = vld [vmem:[#allocation2 + $0x8] sm:$0xff] }
  0xc0   : > { %v7487_v22 = vrot.slane %v8456_v34, 1  ;;  %v2937_v61 = vrot.slane %v2935_v49, 1  ;;  %v8457_v7 = vshll.u32 %v6467_v1, 16  ;;  %5424 = vmatmul.mubr.bf16.gmra.mrb[20].mxu1 %v1127_v48  ;;  %v3277_v10 = vshrl.u32 %v6834_v19, 16  ;;  %8461 = vst [vmem:[#allocation48_spill] sm:$0xff] %v7529_v11 }
  0xc1   : > { %v2154_v45 = vshrl.u32 %v7460_v28, 16  ;;  %v7508_v56 = vsel %vm757_vm7, 0, %v7503_v23  ;;  %v1142_v46 = vor.u32 %v1140_v17, %v1139_v30  ;;  %5427 = vmatprep.mubr.bf16.mxu1 %v1135_v43  ;;  %v1150_v32 = vor.u32 %v1148_v35, %v7474_v21 }
  0xc2   : > { %v3250_v59 = vor.u32 %v8457_v7, %v6539_v39  ;;  %v1153_v20 = vshrl.u32 %v784_v15, 16  ;;  %v2938_v1 = vsel %vm623_vm13, %v2933_v55, %v2937_v61  ;;  %v2941_v54 = vor.u32 %v2939_v37, %v2937_v61 }
  0xc3   : > { %v1732_v36 = vshll.u32 %v7493_v6, 16  ;;  %v7519_v44 = vsel %vm757_vm7, 0, %v7514_v29  ;;  %v7524_v57 = vsel %vm8337_vm6, 0, %v7503_v23  ;;  %5623 = vmatprep.mubr.bf16.mxu0 %v2938_v1  ;;  %v2162_v17 = vshrl.u32 %v7508_v56, 16  ;;  %v8491_v23 = vld [vmem:[#allocation36_spill] sm:$0xff] }
  0xc4   : > { %v2946_v60 = vsel %vm623_vm13, %v2941_v54, %v2945_v4  ;;  %v3251_v33 = vsel %vm1027_vm0, %v3243_v50, %v3250_v59  ;;  %v1658_v62 = vsel %vm1641_vm12, 0, %v7529_v11  ;;  %v8464_v48 = vshrl.u32 %v8463_v24, 16 }
  0xc5   : > { %v3264_v49 = vshll.u32 %v8463_v24, 16  ;;  %v1143_v37 = vsel %vm1027_vm0, %v7429_v31, %v1142_v46  ;;  %v1695_v43 = vshll.u32 %v1658_v62, 16  ;;  %v1740_v34 = vshll.u32 %v7524_v57, 16 }
  0xc6   : > { %v7536_v55 = vrot.slane %v8464_v48, 7  ;;  %v1155_v61 = vrot.slane %v1153_v20, 7  ;;  %v1156_v4 = vshll.u32 %v784_v15, 16  ;;  %v1151_v50 = vsel %vm1027_vm0, %v1139_v30, %v1150_v32  ;;  %v8466_v15 = vld [vmem:[#allocation13_spill] sm:$0xff]  ;;  %v8467_v20 = vld [vmem:[#allocation7_spill] sm:$0xff] }
  0xc7   : > { %v7544_v59 = vrot.slane %v2154_v45, 7  ;;  %5624 = vmatmul.mubr.bf16.gmra.mrb[28].mxu0 %v2946_v60  ;;  %v1693_v1 = vshrl.u32 %v1658_v62, 16  ;;  %v1697_v54 = vrot.slane %v1695_v43, 1  ;;  %v7546_v48 = vrot.slane %v1732_v36, 1  ;;  %v7560_v62 = vld [vmem:[#allocation2 + $0x48] sm:$0xff]  ;;  %v8471_v60 = vld [vmem:[#allocation35_spill] sm:$0xff] }
  0xc8   : > { %v7552_v46 = vsel %vm758_vm9, 0, %v7514_v29  ;;  %5643 = vmatprep.mubr.bf16.mxu0 %v3251_v33  ;;  %v8468_v30 = vshll.u32 %v8467_v20, 16  ;;  %5428 = vmatmul.mubr.bf16.gmra.mrb[24].mxu1 %v1143_v37  ;;  %v7557_v45 = vrot.slane %v2162_v17, 7  ;;  %8469 = vst [vmem:[#allocation16_spill] sm:$0xff] %v7560_v62  ;;  %v7565_v36 = vsel %vm758_vm9, 0, %v7560_v62  ;;  %v6101_v37 = vld [vmem:[%s8259_s1 + $0x1c8] sm:$0xff]  }
  0xc9   : > { %v3266_v43 = vor.u32 %v3264_v49, %v7536_v55  ;;  %5431 = vmatprep.mubr.bf16.mxu1 %v1151_v50  ;;  %v7568_v33 = vrot.slane %v1740_v34, 1  ;;  %v7574_v17 = vsel %vm8324_vm5, 0, %v7514_v29  ;;  %v2170_v7 = vshrl.u32 %v7552_v46, 16  ;;  %v8473_v49 = vld [vmem:[#allocation31_spill] sm:$0xff] }
  0xca   : > { %v3258_v32 = vor.u32 %v8468_v30, %v8466_v15  ;;  %v1158_v30 = vor.u32 %v1156_v4, %v1155_v61  ;;  %vm8472_vm7 = vcmp.ne.s16.totalorder %v8471_v60, 0  ;;  %vm8474_vm9 = vcmp.ne.s16.totalorder %v8473_v49, 0  ;;  %v8479_v49 = vld [vmem:[#allocation32_spill] sm:$0xff] }
  0xcb   : > { %v7580_v31 = vsel %vm8472_vm7, 0, %v7560_v62  ;;  %v7585_v34 = vsel %vm8474_vm9, 0, %v7560_v62  ;;  %v1698_v50 = vor.u32 %v1697_v54, %v1693_v1  ;;  %v3293_v20 = vshrl.u32 %v7565_v36, 16  ;;  %vm8477_vm7 = vmmov %vm8474_vm9  ;;  %v7624_v62 = vld [vmem:[#allocation2 + $0x58] sm:$0xff] }
  0xcc   : > { %v3259_v25 = vsel %vm1027_vm0, %v6539_v39, %v3258_v32  ;;  %v8476_v61 = vshrl.u32 %v8475_v52, 16  ;;  %v3272_v24 = vshll.u32 %v8475_v52, 16  ;;  %v1748_v12 = vshll.u32 %v7574_v17, 16 }
  0xcd   : > { %v3267_v60 = vsel %vm1027_vm0, %v8466_v15, %v3266_v43  ;;  %v7599_v1 = vrot.slane %v3277_v10, 7  ;;  %v3280_v54 = vshll.u32 %v6834_v19, 16  ;;  %v7607_v39 = vsel %vm8477_vm7, 0, %v7602_v9  ;;  %v7640_v19 = vld [vmem:[#allocation2 + $0x60] sm:$0xff] }
  0xce   : > { %v3271_v4 = vrot.slane %v8476_v61, 7  ;;  %v1756_v52 = vshll.u32 %v7580_v31, 16  ;;  %v2178_v32 = vshrl.u32 %v7585_v34, 16  ;;  %v1159_v15 = vsel %vm1027_vm0, %v7474_v21, %v1158_v30  ;;  %v8478_v61 = vld [vmem:[#allocation8_spill] sm:$0xff]  ;;  %8485 = vst [vmem:[#allocation29_spill] sm:$0xff] %v7640_v19 }
  0xcf   : > { %v7614_v10 = vrot.slane %v2170_v7, 7  ;;  %5644 = vmatmul.mubr.bf16.vlgmr.msra.gmra.mrb[0].mxu0 %v3259_v25  ;;  %v1703_v42 = vsel %vm623_vm13, %v1698_v50, %v8478_v61  ;;  %vm8480_vm9 = vcmp.ne.s16.totalorder %v8479_v49, 0  ;;  %v8482_v7 = vld [vmem:[#allocation34_spill] sm:$0xff]  ;;  %v7637_v61 = vrot.slane %v1748_v12, 1 }
  0xd0   : > { %v7622_v35 = vsel %vm8480_vm9, 0, %v7602_v9  ;;  %vm8481_vm7 = vmmov %vm8480_vm9  ;;  %vm8483_vm5 = vcmp.ne.s16.totalorder %v8482_v7, 0  ;;  %v8484_v25 = vld [vmem:[#allocation38_spill] sm:$0xff]  ;;  %5647 = vmatprep.mubr.bf16.mxu0 %v3267_v60  ;;  %v3274_v50 = vor.u32 %v3272_v24, %v3271_v4  ;;  %v3301_v43 = vshrl.u32 %v7607_v39, 16  ;;  %5432 = vmatmul.mubr.bf16.gmra.mrb[28].mxu1 %v1159_v15 }
  0xd1   : > { %v7629_v21 = vsel %vm8481_vm7, 0, %v7624_v62  ;;  %v7634_v30 = vsel %vm8483_vm5, 0, %v7624_v62  ;;  %5676 = vmatpush3.bf16.msra.mxu0 %v8484_v25  ;;  %vm8486_vm9 = vmmov %vm8483_vm5  ;;  %v3282_v29 = vor.u32 %v3280_v54, %v7599_v1  ;;  %v6103_v25 = vld [vmem:[%s8259_s1 + $0x1d0] sm:$0xff]   ;;  %v7651_v24 = vrot.slane %v1756_v52, 1  ;;  %5451 = vmatprep.mubr.bf16.mxu1 %v1703_v42 }
  0xd2   : > { %v7645_v49 = vsel %vm8486_vm9, 0, %v7640_v19  ;;  %5677 = vmatprep.subr.bf16.mxu0 %v6101_v37  ;;  %v7654_v60 = vrot.slane %v2178_v32, 7  ;;  %v3309_v3 = vshrl.u32 %v7629_v21, 16  ;;  %v8489_v16 = vshrl.u32 %v8488_v8, 16 }
  0xd3   : > { %v3317_v52 = vshrl.u32 %v7645_v49, 16  ;;  %v3275_v15 = vsel %vm1027_vm0, %v7536_v55, %v3274_v50  ;;  %v8490_v32 = vshrl.u32 %v7519_v44, 16  ;;  %v3288_v42 = vshll.u32 %v7519_v44, 16  ;;  %v6105_v55 = vld [vmem:[%s8259_s1 + $0x1d8] sm:$0xff]   ;;  %v8495_v50 = vld [vmem:[#allocation37_spill] sm:$0xff] }
  0xd4   : > { %v1714_v2 = vor.u32 %v8489_v16, %v8487_v5  ;;  %vm8492_vm5 = vcmp.ne.s16.totalorder %v8491_v23, 0  ;;  %v3283_v54 = vsel %vm1027_vm0, %v3271_v4, %v3282_v29  ;;  %v7675_v8 = vrot.slane %v3293_v20, 7  ;;  %v7693_v20 = vld [vmem:[#allocation2 + $0x70] sm:$0xff]  ;;  %v8499_v4 = vld [vmem:[#allocation12_spill] sm:$0xff] }
  0xd5   : > { %5678 = vmatpush3.bf16.msra.mxu0 %v6101_v37  ;;  %v3287_v12 = vrot.slane %v8490_v32, 7  ;;  %v7672_v7 = vsel %vm8492_vm5, 0, %v7640_v19  ;;  %v3296_v16 = vshll.u32 %v7565_v36, 16  ;;  %v7681_v37 = vld [vmem:[#allocation2 + $0x68] sm:$0xff]  ;;  %vm8494_vm7 = vmmov %vm8492_vm5  ;;  %vm8496_vm9 = vcmp.ne.s16.totalorder %v8495_v50, 0  ;;  %8497 = vst [vmem:[#allocation7_spill] sm:$0xff] %v7693_v20 }
  0xd6   : > { %5679 = vmatprep.subr.bf16.mxu0 %v6103_v25  ;;  %8493 = vst [vmem:[#allocation13_spill] sm:$0xff] %v7681_v37  ;;  %v7686_v44 = vsel %vm8494_vm7, 0, %v7681_v37  ;;  %v7691_v29 = vsel %vm8496_vm9, 0, %v7681_v37  ;;  %vm8498_vm5 = vmmov %vm8496_vm9  ;;  %v1711_v32 = vsel %vm623_vm13, %v8499_v4, %v8487_v5  ;;  %vm8500_vm7 = vcmp.ne.s16.totalorder %v7226_v58, 0  ;;  %v6108_v5 = vld [vmem:[%s8259_s1 + $0xc8] sm:$0xff]   ;;  %v8509_v19 = vld [vmem:[#allocation26_spill] sm:$0xff] }
  0xd7   : > { %v7698_v36 = vsel %vm8498_vm5, 0, %v7693_v20  ;;  %v7706_v23 = vsel %vm8500_vm7, 0, %v7693_v20  ;;  %vm8501_vm9 = vmmov %vm8500_vm7  ;;  %vm8502_vm6 = vcmp.ne.s16.totalorder %v7247_v18, 0  ;;  %5648 = vmatmul.mubr.bf16.gmra.mrb[4].mxu0 %v3275_v15  ;;  %v1719_v37 = vsel %vm623_vm13, %v1714_v2, %v8503_v40  ;;  %v6107_v18 = vld [vmem:[%s8259_s1 + $0x1e0] sm:$0xff]   ;;  %v8510_v15 = vld [vmem:[#allocation9_spill] sm:$0xff] }
  0xd8   : > { %v7711_v47 = vsel %vm8501_vm9, 0, %v7003_v13  ;;  %v7716_v50 = vsel %vm8502_vm6, 0, %v7003_v13  ;;  %vm8504_vm5 = vmmov %vm8502_vm6  ;;  %5651 = vmatprep.mubr.bf16.mxu0 %v3283_v54  ;;  %v3290_v58 = vor.u32 %v3288_v42, %v3287_v12  ;;  %v7728_v20 = vrot.slane %v3301_v43, 7  ;;  %5452 = vmatmul.mubr.bf16.vlgmr.msra.gmra.mrb[0].mxu1 %v1711_v32 }
  0xd9   : > { %v7726_v4 = vsel %vm8504_vm5, 0, %v7134_v41  ;;  %5680 = vmatpush3.bf16.msra.mxu0 %v6103_v25  ;;  %v3304_v13 = vshll.u32 %v7607_v39, 16  ;;  %v3325_v2 = vshrl.u32 %v7686_v44, 16  ;;  %v3298_v38 = vor.u32 %v3296_v16, %v7675_v8  ;;  %5484 = vmatpush3.bf16.msra.mxu1 %v7415_v53  ;;  %v8506_v39 = vld [vmem:[#allocation19_spill] sm:$0xff] }
  0xda   : > { %8505 = vst [vmem:[#allocation31_spill] sm:$0xff] %v7726_v4  ;;  %5681 = vmatprep.subr.bf16.mxu0 %v6105_v55  ;;  %5455 = vmatprep.mubr.bf16.mxu1 %v1719_v37  ;;  %v8507_v54 = vshrl.u32 %v8506_v39, 16  ;;  %v8508_v16 = vshrl.u32 %v6786_v63, 16  ;;  %v7753_v43 = vsel %vm766_vm15, 0, %v7134_v41  ;;  %v7761_v63 = vsel %vm766_vm15, 0, %v7188_v26 }
  0xdb   : > { %5485 = vmatprep.subr.bf16.mxu1 %v6108_v5  ;;  %v3291_v53 = vsel %vm1027_vm0, %v7599_v1, %v3290_v58  ;;  %v3306_v37 = vor.u32 %v3304_v13, %v7728_v20  ;;  %v7766_v39 = vrot.slane %v3309_v3, 7  ;;  %v3299_v41 = vsel %vm1027_vm0, %v3287_v12, %v3298_v38  ;;  %v8512_v12 = vld [vmem:[#allocation18_spill] sm:$0xff]  ;;  %v8514_v58 = vld [vmem:[#allocation25_spill] sm:$0xff] }
  0xdc   : > { %v1722_v42 = vor.u32 %v8507_v54, %v8503_v40  ;;  %v1730_v11 = vor.u32 %v8508_v16, %v7487_v22  ;;  %v6110_v40 = vld [vmem:[%s8259_s1 + $0xd0] sm:$0xff]   ;;  %v3312_v54 = vshll.u32 %v7629_v21, 16  ;;  %v7770_v16 = vrot.slane %v3317_v52, 7  ;;  %v8511_v21 = vld [vmem:[#allocation20_spill] sm:$0xff]  ;;  %v8515_v13 = vld [vmem:[#allocation22_spill] sm:$0xff] }
  0xdd   : > { %5682 = vmatpush3.bf16.msra.mxu0 %v6105_v55  ;;  %v7778_v1 = vsel %vm1027_vm0, %v8510_v15, %v8509_v19  ;;  %5486 = vmatpush3.bf16.msra.mxu1 %v6108_v5  ;;  %v8513_v52 = vshll.u32 %v8512_v12, 16  ;;  %v8516_v32 = vshll.u32 %v8515_v13, 16  ;;  %v3320_v4 = vshll.u32 %v7645_v49, 16 }
  0xde   : > { %5683 = vmatprep.subr.bf16.mxu0 %v6107_v18  ;;  %v1727_v3 = vsel %vm623_vm13, %v1722_v42, %v7487_v22  ;;  %v1735_v38 = vsel %vm623_vm13, %v1730_v11, %v7546_v48  ;;  %5487 = vmatprep.subr.bf16.mxu1 %v6110_v40  ;;  %v6112_v22 = vld [vmem:[%s8259_s1 + $0xd8] sm:$0xff]   ;;  %v8517_v19 = vshll.u32 %v7460_v28, 16  ;;  %v8518_v5 = vshll.u32 %v7508_v56, 16 }
  0xdf   : > { %v2143_v55 = vor.u32 %v8513_v52, %v8511_v21  ;;  %v2151_v25 = vor.u32 %v8516_v32, %v8514_v58  ;;  %5652 = vmatmul.mubr.bf16.gmra.mrb[8].mxu0 %v3291_v53  ;;  %v8519_v12 = vshll.u32 %v7552_v46, 16  ;;  %v3307_v49 = vsel %vm1027_vm0, %v7675_v8, %v3306_v37  ;;  %v8520_v53 = vld [vmem:[#allocation14_spill] sm:$0xff]  ;;  %v6111_v46 = vld [vmem:[%s8259_s1 + $0x1f0] sm:$0xff]  }
  0xe0   : > { %v2159_v11 = vor.u32 %v8517_v19, %v7544_v59  ;;  %v2167_v42 = vor.u32 %v8518_v5, %v7557_v45  ;;  %5655 = vmatprep.mubr.bf16.mxu0 %v3299_v41  ;;  %v8521_v56 = vshrl.u32 %v7622_v35, 16  ;;  %v3314_v19 = vor.u32 %v3312_v54, %v7766_v39  ;;  %5456 = vmatmul.mubr.bf16.gmra.mrb[4].mxu1 %v1727_v3 }
  0xe1   : > { %v2175_v32 = vor.u32 %v8519_v12, %v7614_v10  ;;  %5684 = vmatpush3.bf16.msra.mxu0 %v6107_v18  ;;  %v7807_v52 = vsel %vm1027_vm0, %v8520_v53, %v2143_v55  ;;  %v7811_v28 = vsel %vm1027_vm0, %v8511_v21, %v2151_v25  ;;  %v2189_v25 = vshll.u32 %v7622_v35, 16  ;;  %5459 = vmatprep.mubr.bf16.mxu1 %v1735_v38  ;;  %v6116_v53 = vld [vmem:[%s8259_s1 + $0xe8] sm:$0xff]  }
  0xe2   : > { %v2188_v13 = vrot.slane %v8521_v56, 7  ;;  %5685 = vmatprep.subr.bf16.mxu0 %v6109_v0  ;;  %v7821_v8 = vsel %vm1027_vm0, %v8514_v58, %v2159_v11  ;;  %v7825_v18 = vsel %vm1027_vm0, %v7544_v59, %v2167_v42  ;;  %v7831_v37 = vsel %vm767_vm14, 0, %v7188_v26  ;;  %5488 = vmatpush3.bf16.msra.mxu1 %v6110_v40 }
  0xe3   : > { %v8522_v41 = vshrl.u32 %v7493_v6, 16  ;;  %v7838_v3 = vsel %vm1027_vm0, %v7557_v45, %v2175_v32  ;;  %v8523_v59 = vshll.u32 %v7585_v34, 16  ;;  %v7843_v35 = vrot.slane %v3325_v2, 7  ;;  %5489 = vmatprep.subr.bf16.mxu1 %v6112_v22  ;;  %v6114_v6 = vld [vmem:[%s8259_s1 + $0xe0] sm:$0xff]  }
  0xe4   : > { %v3328_v55 = vshll.u32 %v7686_v44, 16  ;;  %v8524_v26 = vshrl.u32 %v7524_v57, 16  ;;  %vm8525_vm6 = vcmp.ne.s16.totalorder %v7331_v27, 0  ;;  %v8526_v44 = vshrl.u32 %v7634_v30, 16 }
  0xe5   : > { %v1738_v54 = vor.u32 %v8522_v41, %v7546_v48  ;;  %v2183_v21 = vor.u32 %v8523_v59, %v7654_v60  ;;  %v2191_v48 = vor.u32 %v2189_v25, %v2188_v13  ;;  %5686 = vmatpush3.bf16.msra.mxu0 %v6109_v0  ;;  %v7855_v45 = vsel %vm8525_vm6, 0, %v7602_v9  ;;  %v6113_v0 = vld [vmem:[%s8259_s1 + $0x1f8] sm:$0xff]  }
  0xe6   : > { %v1746_v38 = vor.u32 %v8524_v26, %v7568_v33  ;;  %v2196_v57 = vrot.slane %v8526_v44, 7  ;;  %v2197_v2 = vshll.u32 %v7634_v30, 16  ;;  %v3315_v40 = vsel %vm1027_vm0, %v7728_v20, %v3314_v19  ;;  %5687 = vmatprep.subr.bf16.mxu0 %v6111_v46  ;;  %5490 = vmatpush3.bf16.msra.mxu1 %v6112_v22 }
  0xe7   : > { %v7859_v34 = vsel %vm1027_vm0, %v7614_v10, %v2183_v21  ;;  %v3322_v58 = vor.u32 %v3320_v4, %v7770_v16  ;;  %v7872_v11 = vsel %vm1027_vm0, %v7654_v60, %v2191_v48  ;;  %v8527_v10 = vshrl.u32 %v7672_v7, 16  ;;  %5656 = vmatmul.mubr.bf16.gmra.mrb[12].mxu0 %v3307_v49  ;;  %5491 = vmatprep.subr.bf16.mxu1 %v6114_v6 }
  0xe8   : > { %v2234_v42 = vshrl.u32 %v7753_v43, 16  ;;  %v1743_v30 = vsel %vm623_vm13, %v1738_v54, %v7568_v33  ;;  %v2199_v20 = vor.u32 %v2197_v2, %v2196_v57  ;;  %v2205_v4 = vshll.u32 %v7672_v7, 16  ;;  %5659 = vmatprep.mubr.bf16.mxu0 %v3315_v40 }
  0xe9   : > { %v2204_v5 = vrot.slane %v8527_v10, 7  ;;  %v2242_v12 = vshrl.u32 %v7831_v37, 16  ;;  %v1751_v32 = vsel %vm623_vm13, %v1746_v38, %v7637_v61  ;;  %v1764_v60 = vshll.u32 %v7855_v45, 16  ;;  %5688 = vmatpush3.bf16.msra.mxu0 %v6111_v46  ;;  %5460 = vmatmul.mubr.bf16.gmra.mrb[8].mxu1 %v1743_v30 }
  0xea   : > { %v8528_v56 = vshrl.u32 %v7691_v29, 16  ;;  %v3330_v22 = vor.u32 %v3328_v55, %v7843_v35  ;;  %v7891_v7 = vsel %vm1027_vm0, %v2188_v13, %v2199_v20  ;;  %v2213_v19 = vshll.u32 %v7691_v29, 16  ;;  %5689 = vmatprep.subr.bf16.mxu0 %v6113_v0  ;;  %v7908_v13 = vld [vmem:[%s8259_s1 + $0x200] sm:$0xff]   ;;  %5463 = vmatprep.mubr.bf16.mxu1 %v1751_v32 }
  0xeb   : > { %v2207_v49 = vor.u32 %v2205_v4, %v2204_v5  ;;  %v3323_v25 = vsel %vm1027_vm0, %v7766_v39, %v3322_v58  ;;  %v8529_v41 = vshrl.u32 %v7698_v36, 16  ;;  %v3336_v59 = vshll.u32 %v7698_v36, 16  ;;  %5492 = vmatpush3.bf16.msra.mxu1 %v6114_v6  ;;  %v8534_v58 = vld [vmem:[#allocation29_spill] sm:$0xff] }
  0xec   : > { %v2212_v33 = vrot.slane %v8528_v56, 7  ;;  %v8530_v21 = vshrl.u32 %v7711_v47, 16  ;;  %v8531_v29 = vshrl.u32 %v7574_v17, 16  ;;  %v1668_v36 = vsel %vm1651_vm4, 0, %v7624_v62  ;;  %5493 = vmatprep.subr.bf16.mxu1 %v6116_v53  ;;  %v6118_v17 = vld [vmem:[%s8259_s1 + $0xf0] sm:$0xff]  }
  0xed   : > { %v7898_v54 = vrot.slane %v8529_v41, 7  ;;  %v7917_v46 = vsel %vm1027_vm0, %v2196_v57, %v2207_v49  ;;  %v8532_v38 = vshrl.u32 %v7580_v31, 16  ;;  %v1766_v44 = vrot.slane %v1764_v60, 1  ;;  %5690 = vmatpush3.bf16.msra.mxu0 %v6113_v0  ;;  %v6120_v49 = vld [vmem:[%s8259_s1 + $0xf8] sm:$0xff]   ;;  %v8537_v41 = vld [vmem:[#allocation48_spill] sm:$0xff] }
  0xee   : > { %v7903_v26 = vrot.slane %v8530_v21, 7  ;;  %v1754_v39 = vor.u32 %v8531_v29, %v7637_v61  ;;  %v2215_v55 = vor.u32 %v2213_v19, %v2212_v33  ;;  %v8533_v61 = vshrl.u32 %v7706_v23, 16  ;;  %5723 = vmatprep.subr.bf16.mxu0 %v7908_v13  ;;  %v8538_v29 = vld [vmem:[#allocation13_spill] sm:$0xff] }
  0xef   : > { %v1762_v48 = vor.u32 %v8532_v38, %v7651_v24  ;;  %v2221_v40 = vshll.u32 %v7706_v23, 16  ;;  %v3331_v6 = vsel %vm1027_vm0, %v7770_v16, %v3330_v22  ;;  %v3344_v57 = vshll.u32 %v7711_v47, 16  ;;  %5494 = vmatpush3.bf16.msra.mxu1 %v6116_v53  ;;  %5660 = vmatmul.mubr.bf16.gmra.mrb[16].mxu0 %v3323_v25 }
  0xf0   : > { %v2220_v2 = vrot.slane %v8533_v61, 7  ;;  %v7934_v10 = vsel %vm1652_vm2, 0, %v8534_v58  ;;  %v7937_v30 = vsel %vm1027_vm0, %v2204_v5, %v2215_v55  ;;  %v1772_v20 = vshll.u32 %v1668_v36, 16  ;;  %5495 = vmatprep.subr.bf16.mxu1 %v6118_v17  ;;  %5663 = vmatprep.mubr.bf16.mxu0 %v3331_v6 }
  0xf1   : > { %v8536_v23 = vshrl.u32 %v7716_v50, 16  ;;  %v2229_v16 = vshll.u32 %v7716_v50, 16  ;;  %v3338_v47 = vor.u32 %v3336_v59, %v7898_v54  ;;  %v1759_v0 = vsel %vm623_vm13, %v1754_v39, %v7651_v24  ;;  %v8539_v39 = vld [vmem:[#allocation40_spill] sm:$0xff] }
  0xf2   : > { %v2223_v4 = vor.u32 %v2221_v40, %v2220_v2  ;;  %v1768_v60 = vshrl.u32 %v7855_v45, 16  ;;  %v1776_v56 = vshrl.u32 %v1668_v36, 16  ;;  %v1767_v5 = vsel %vm623_vm13, %v1762_v48, %v1766_v44  ;;  %5464 = vmatmul.mubr.bf16.gmra.mrb[12].mxu1 %v1759_v0  ;;  %v8541_v48 = vld [vmem:[#allocation31_spill] sm:$0xff] }
  0xf3   : > { %v2228_v32 = vrot.slane %v8536_v23, 7  ;;  %v1780_v22 = vshll.u32 %v7934_v10, 16  ;;  %v3357_v24 = vshrl.u32 %v7761_v63, 16  ;;  %v7959_v45 = vsel %vm767_vm14, 0, %v8537_v41  ;;  %5467 = vmatprep.mubr.bf16.mxu1 %v1767_v5  ;;  %5496 = vmatpush3.bf16.msra.mxu1 %v6118_v17 }
  0xf4   : > { %v7953_v50 = vsel %vm1027_vm0, %v2212_v33, %v2223_v4  ;;  %v2236_v53 = vrot.slane %v2234_v42, 7  ;;  %v2237_v25 = vshll.u32 %v7753_v43, 16  ;;  %v3346_v59 = vor.u32 %v3344_v57, %v7903_v26  ;;  %5497 = vmatprep.subr.bf16.mxu1 %v6120_v49 }
  0xf5   : > { %v2231_v19 = vor.u32 %v2229_v16, %v2228_v32  ;;  %v1774_v21 = vrot.slane %v1772_v20, 1  ;;  %vm8540_vm15 = vcmp.ne.s16.totalorder %v8539_v39, 0  ;;  %v1770_v55 = vor.u32 %v1768_v60, %v1766_v44  ;;  %v8543_v20 = vld [vmem:[#allocation7_spill] sm:$0xff] }
  0xf6   : > { %v1670_v33 = vsel %vm8540_vm15, 0, %v8538_v29  ;;  %v2239_v51 = vor.u32 %v2237_v25, %v2236_v53  ;;  %v2244_v42 = vrot.slane %v2242_v12, 7  ;;  %v2245_v43 = vshll.u32 %v7831_v37, 16 }
  0xf7   : > { %v7967_v36 = vsel %vm1027_vm0, %v2220_v2, %v2231_v19  ;;  %v3339_v38 = vsel %vm1027_vm0, %v7843_v35, %v3338_v47  ;;  %v8542_v61 = vshrl.u32 %v8541_v48, 16  ;;  %v1778_v6 = vor.u32 %v1776_v56, %v1774_v21  ;;  %5498 = vmatpush3.bf16.msra.mxu1 %v6120_v49 }
  0xf8   : > { %v1782_v57 = vrot.slane %v1780_v22, 1  ;;  %v3352_v2 = vshll.u32 %v8541_v48, 16  ;;  %v1671_v17 = vsel %vm1654_vm10, 0, %v8543_v20  ;;  %v7981_v4 = vsel %vm1027_vm0, %v2228_v32, %v2239_v51  ;;  %5664 = vmatmul.mubr.bf16.gmra.mrb[20].mxu0 %v3339_v38 }
  0xf9   : > { %v3351_v40 = vrot.slane %v8542_v61, 7  ;;  %v2247_v12 = vor.u32 %v2245_v43, %v2244_v42  ;;  %v3347_v37 = vsel %vm1027_vm0, %v7898_v54, %v3346_v59  ;;  %v3359_v35 = vrot.slane %v3357_v24, 7  ;;  %v7995_v54 = vld [vmem:[%s8259_s1 + $0x100] sm:$0xff]   ;;  %v7999_v24 = vld [vmem:[#allocation2 + $0x78] sm:$0xff] }
  0xfa   : > { %v3360_v23 = vshll.u32 %v7761_v63, 16  ;;  %v1788_v16 = vshll.u32 %v1670_v33, 16  ;;  %v1775_v47 = vsel %vm623_vm13, %v1770_v55, %v1774_v21  ;;  %v1784_v0 = vshrl.u32 %v7934_v10, 16  ;;  %5771 = vmatprep.subr.bf16.mxu1 %v7995_v54  ;;  %5667 = vmatprep.mubr.bf16.mxu0 %v3347_v37  ;;  %v8007_v42 = vld [vmem:[#allocation2 + $0x80] sm:$0xff] }
  0xfb   : > { %v7989_v60 = vsel %vm1027_vm0, %v2236_v53, %v2247_v12  ;;  %v1783_v32 = vsel %vm623_vm13, %v1778_v6, %v1782_v57  ;;  %v1792_v56 = vshrl.u32 %v1670_v33, 16  ;;  %v1796_v5 = vshll.u32 %v1671_v17, 16  ;;  %5468 = vmatmul.mubr.bf16.gmra.mrb[16].mxu1 %v1775_v47 }
  0xfc   : > { %v3365_v63 = vshrl.u32 %v7959_v45, 16  ;;  %v3354_v10 = vor.u32 %v3352_v2, %v3351_v40  ;;  %v3362_v22 = vor.u32 %v3360_v23, %v3359_v35  ;;  %v1790_v49 = vrot.slane %v1788_v16, 1  ;;  %5471 = vmatprep.mubr.bf16.mxu1 %v1783_v32  ;;  %v2081_v16 = vld [vmem:[#allocation2 + $0x8] sm:$0x80] }
  0xfd   : > { %v1786_v19 = vor.u32 %v1784_v0, %v1782_v57  ;;  %v1672_v25 = vsel %vm1655_vm11, 0, %v7999_v24  ;;  %v1798_v21 = vrot.slane %v1796_v5, 1  ;;  %v3368_v51 = vshll.u32 %v7959_v45, 16  ;;  %v1401_v45 = vld [vmem:[#allocation2 + $0x88] sm:$0x1] }
  0xfe   : > { %v1794_v59 = vor.u32 %v1792_v56, %v1790_v49  ;;  %v3355_v33 = vsel %vm1027_vm0, %v7903_v26, %v3354_v10  ;;  %v3367_v55 = vrot.slane %v3365_v63, 7  ;;  %v1673_v38 = vsel %vm1656_vm1, 0, %v8007_v42  ;;  %v8548_v5 = vld [vmem:[#allocation4_spill] sm:$0xff] }
  0xff   : > { %v3363_v48 = vsel %vm1027_vm0, %v3351_v40, %v3362_v22  ;;  %v1804_v61 = vshll.u32 %v1672_v25, 16  ;;  %v1791_v6 = vsel %vm623_vm13, %v1786_v19, %v1790_v49  ;;  %v1800_v57 = vshrl.u32 %v1671_v17, 16  ;;  %v8550_v19 = vld [vmem:[#allocation6_spill] sm:$0xff] }
 0x100   : > { %5668 = vmatmul.mubr.bf16.gmra.mrb[24].mxu0 %v3355_v33  ;;  %v1799_v2 = vsel %vm623_vm13, %v1794_v59, %v1798_v21  ;;  %v1808_v12 = vshrl.u32 %v1672_v25, 16  ;;  %v1812_v26 = vshll.u32 %v1673_v38, 16  ;;  %v3370_v37 = vor.u32 %v3368_v51, %v3367_v55  ;;  %v6141_v33 = vld [vmem:[#allocation2 + $0x18] sm:$0xff] }
 0x101   : > { %5671 = vmatprep.mubr.bf16.mxu0 %v3363_v48  ;;  %v1806_v23 = vrot.slane %v1804_v61, 1  ;;  %v1802_v47 = vor.u32 %v1800_v57, %v1798_v21  ;;  %v1674_v56 = vsel %vm1657_vm8, 0, %v1401_v45  ;;  %vm8549_vm14 = vcmp.ne.s16.totalorder %v8548_v5, 0  ;;  %v6144_v45 = vld [vmem:[%s8259_s1 + $0x108] sm:$0xff]   ;;  %v3888_v5 = vld [vmem:[#allocation2 + $0x20] sm:$0xff] }
 0x102   : > { %v1814_v32 = vrot.slane %v1812_v26, 1  ;;  %v3371_v17 = vsel %vm1027_vm0, %v3359_v35, %v3370_v37  ;;  %v2083_v63 = vsel %vm8549_vm14, 0, %v2081_v16  ;;  %v1816_v22 = vshrl.u32 %v1673_v38, 16  ;;  %v6117_v38 = vld [vmem:[%s8259_s1 + $0x208] sm:$0xff]   ;;  %v6122_v37 = vld [vmem:[%s8259_s1 + $0x220] sm:$0xff]   ;;  %v6124_v16 = vld [vmem:[%s8259_s1 + $0x230] sm:$0xff]  }
 0x103   : > { %5472 = vmatmul.mubr.bf16.gmra.mrb[20].mxu1 %v1791_v6  ;;  %v1810_v0 = vor.u32 %v1808_v12, %v1806_v23  ;;  %v1807_v10 = vsel %vm623_vm13, %v1802_v47, %v1806_v23  ;;  %v1820_v49 = vshll.u32 %v1674_v56, 16  ;;  %v2125_v25 = vshll.u32 %v8550_v19, 16  ;;  %v6142_v6 = vld [vmem:[#allocation2 + $0x20] sm:$0xff]  ;;  %v6121_v12 = vld [vmem:[%s8259_s1 + $0x218] sm:$0xff]   ;;  %v8551_v26 = vld [vmem:[#allocation44_spill] sm:$0xff] }
 0x104   : > { %5475 = vmatprep.mubr.bf16.mxu1 %v1799_v2  ;;  %v2118_v21 = vshrl.u32 %v2083_v63, 16  ;;  %v1818_v55 = vor.u32 %v1816_v22, %v1814_v32  ;;  %v8030_v2 = vld [vmem:[#allocation2 + $0x28] sm:$0xff]  ;;  %v6146_v47 = vld [vmem:[%s8259_s1 + $0x118] sm:$0xff]   ;;  %v3890_v19 = vld [vmem:[#allocation2 + $0x30] sm:$0xff]  ;;  %vm8571_vm15 = vcmp.ne.s16.totalorder %v7331_v27, 0 }
 0x105   : > { %v1815_v59 = vsel %vm623_vm13, %v1810_v0, %v1814_v32  ;;  %v1822_v51 = vrot.slane %v1820_v49, 1  ;;  %v2127_v48 = vor.u32 %v2125_v25, %v8510_v15  ;;  %v6119_v15 = vld [vmem:[%s8259_s1 + $0x210] sm:$0xff]   ;;  %v6123_v23 = vld [vmem:[%s8259_s1 + $0x228] sm:$0xff]   ;;  %v6125_v0 = vld [vmem:[%s8259_s1 + $0x238] sm:$0xff]  }
 0x106   : > { %v2120_v35 = vrot.slane %v2118_v21, 7  ;;  %v6149_v32 = vld [vmem:[%s8259_s1 + $0x130] sm:$0xff]   ;;  %v8558_v25 = vld [vmem:[#allocation10_spill] sm:$0xff]  ;;  %v8101_v21 = vld [vmem:[#allocation2 + $0x88] sm:$0xff] }
 0x107   : > { %v1823_v61 = vsel %vm623_vm13, %v1818_v55, %v1822_v51  ;;  %v8560_v55 = vld [vmem:[#allocation17_spill] sm:$0xff] }
 0x108   : > { %5672 = vmatmul.mubr.bf16.gmra.mrb[28].mxu0 %v3371_v17  ;;  %v2128_v57 = vsel %vm1027_vm0, %v2120_v35, %v2127_v48  ;;  %vm8561_vm7 = vcmp.ne.s16.totalorder %v8560_v55, 0 }
 0x109   : > { %5691 = vmatprep.mubr.bf16.mxu0 %v6141_v33 }
 0x10b   : > { %5476 = vmatmul.mubr.bf16.gmra.mrb[24].mxu1 %v1807_v10 }
 0x10c   : > { %5479 = vmatprep.mubr.bf16.mxu1 %v1815_v59 }
 0x110   : > { %5692 = vmatmul.mubr.bf16.vlgmr.msra.gmra.mrb[0].mxu0 %v6142_v6  ;;  %v3891_v6 = vld [vmem:[#allocation2 + $0x38] sm:$0xff] }
 0x111   : > { %5724 = vmatpush3.bf16.msra.mxu0 %v7908_v13  ;;  %5695 = vmatprep.mubr.bf16.mxu0 %v8030_v2  ;;  %v8552_v13 = vld [vmem:[#allocation46_spill] sm:$0xff] }
 0x112   : > { %5725 = vmatprep.subr.bf16.mxu0 %v6117_v38 }
 0x113   : > { %5480 = vmatmul.mubr.bf16.gmra.mrb[28].mxu1 %v1823_v61 }
 0x114   : > { %5499 = vmatprep.mubr.bf16.mxu1 %v2128_v57 }
 0x115   : > { %5726 = vmatpush3.bf16.msra.mxu0 %v6117_v38 }
 0x116   : > { %5727 = vmatprep.subr.bf16.mxu0 %v6119_v15 }
 0x118   : > { %5696 = vmatmul.mubr.bf16.gmra.mrb[4].mxu0 %v8551_v26 }
 0x119   : > { %5699 = vmatprep.mubr.bf16.mxu0 %v8552_v13  ;;  %5728 = vmatpush3.bf16.msra.mxu0 %v6119_v15 }
 0x11a   : > { %5729 = vmatprep.subr.bf16.mxu0 %v6121_v12 }
 0x11b   : > { %5500 = vmatmul.mubr.bf16.vlgmr.msra.gmra.mrb[0].mxu1 %v7778_v1  ;;  %v8553_v1 = vld [vmem:[#allocation47_spill] sm:$0xff] }
 0x11c   : > { %5779 = vmatpush3.bf16.msra.mxu1 %v7995_v54  ;;  %5503 = vmatprep.mubr.bf16.mxu1 %v7807_v52  ;;  %v6145_v54 = vld [vmem:[%s8259_s1 + $0x110] sm:$0xff]   ;;  %v8554_v52 = vld [vmem:[#allocation16_spill] sm:$0xff] }
 0x11d   : > { %5772 = vmatprep.subr.bf16.mxu1 %v6144_v45  ;;  %5730 = vmatpush3.bf16.msra.mxu0 %v6121_v12  ;;  %v8562_v12 = vld [vmem:[#allocation24_spill] sm:$0xff] }
 0x11e   : > { %5731 = vmatprep.subr.bf16.mxu0 %v6122_v37  ;;  %vm8563_vm9 = vcmp.ne.s16.totalorder %v8562_v12, 0 }
 0x120   : > { %5780 = vmatpush3.bf16.msra.mxu1 %v6144_v45  ;;  %5700 = vmatmul.mubr.bf16.gmra.mrb[8].mxu0 %v8553_v1 }
 0x121   : > { %5773 = vmatprep.subr.bf16.mxu1 %v6145_v54  ;;  %5703 = vmatprep.mubr.bf16.mxu0 %v8554_v52 }
 0x122   : > { %5732 = vmatpush3.bf16.msra.mxu0 %v6122_v37 }
 0x123   : > { %5504 = vmatmul.mubr.bf16.gmra.mrb[4].mxu1 %v7811_v28  ;;  %5733 = vmatprep.subr.bf16.mxu0 %v6123_v23  ;;  %v6147_v28 = vld [vmem:[%s8259_s1 + $0x120] sm:$0xff]  }
 0x124   : > { %5507 = vmatprep.mubr.bf16.mxu1 %v7821_v8  ;;  %5781 = vmatpush3.bf16.msra.mxu1 %v6145_v54  ;;  %v6148_v8 = vld [vmem:[%s8259_s1 + $0x128] sm:$0xff]  }
 0x125   : > { %5774 = vmatprep.subr.bf16.mxu1 %v6146_v47 }
 0x126   : > { %5734 = vmatpush3.bf16.msra.mxu0 %v6123_v23 }
 0x127   : > { %5735 = vmatprep.subr.bf16.mxu0 %v6124_v16 }
 0x128   : > { %5782 = vmatpush3.bf16.msra.mxu1 %v6146_v47  ;;  %5704 = vmatmul.mubr.bf16.gmra.mrb[12].mxu0 %v7602_v9  ;;  %v3893_v47 = vld [vmem:[#allocation2 + $0x48] sm:$0xff] }
 0x129   : > { %5775 = vmatprep.subr.bf16.mxu1 %v6147_v28  ;;  %5707 = vmatprep.mubr.bf16.mxu0 %v7624_v62 }
 0x12a   : > { %5736 = vmatpush3.bf16.msra.mxu0 %v6124_v16 }
 0x12b   : > { %5508 = vmatmul.mubr.bf16.gmra.mrb[8].mxu1 %v7825_v18  ;;  %5737 = vmatprep.subr.bf16.mxu0 %v6125_v0  ;;  %v3887_v18 = vld [vmem:[#allocation2 + $0x18] sm:$0xff] }
 0x12c   : > { %5511 = vmatprep.mubr.bf16.mxu1 %v7838_v3  ;;  %5783 = vmatpush3.bf16.msra.mxu1 %v6147_v28  ;;  %v6150_v3 = vld [vmem:[%s8259_s1 + $0x138] sm:$0xff]   ;;  %v3904_v17 = vsel %vm1641_vm12, 0, %v3887_v18  ;;  %vm8559_vm12 = vcmp.ne.s16.totalorder %v8558_v25, 0  ;;  %v3894_v28 = vld [vmem:[#allocation2 + $0x50] sm:$0xff] }
 0x12d   : > { %5776 = vmatprep.subr.bf16.mxu1 %v6148_v8  ;;  %v3941_v63 = vshll.u32 %v3904_v17, 16  ;;  %v3939_v10 = vshrl.u32 %v3904_v17, 16  ;;  %v3906_v59 = vsel %vm8559_vm12, 0, %v8030_v2  ;;  %v3892_v2 = vld [vmem:[#allocation2 + $0x40] sm:$0xff] }
 0x12e   : > { %5738 = vmatpush3.bf16.msra.mxu0 %v6125_v0  ;;  %v3954_v51 = vshll.u32 %v3906_v59, 16  ;;  %v3958_v38 = vshrl.u32 %v3906_v59, 16  ;;  %v3909_v37 = vsel %vm1646_vm3, 0, %v3892_v2 }
 0x12f   : > { %v3943_v22 = vrot.slane %v3941_v63, 1  ;;  %v3978_v16 = vshll.u32 %v3909_v37, 16  ;;  %v3982_v63 = vshrl.u32 %v3909_v37, 16 }
 0x130   : > { %5784 = vmatpush3.bf16.msra.mxu1 %v6148_v8  ;;  %5708 = vmatmul.mubr.bf16.gmra.mrb[16].mxu0 %v8534_v58  ;;  %v3956_v57 = vrot.slane %v3954_v51, 1 }
 0x131   : > { %5777 = vmatprep.subr.bf16.mxu1 %v6149_v32  ;;  %5711 = vmatprep.mubr.bf16.mxu0 %v8538_v29 }
 0x132   : > { %v3960_v26 = vor.u32 %v3958_v38, %v3956_v57 }
 0x133   : > { %5512 = vmatmul.mubr.bf16.gmra.mrb[12].mxu1 %v7859_v34  ;;  %v8556_v34 = vld [vmem:[#allocation5_spill] sm:$0xff] }
 0x134   : > { %5515 = vmatprep.mubr.bf16.mxu1 %v7872_v11  ;;  %5785 = vmatpush3.bf16.msra.mxu1 %v6149_v32  ;;  %vm8557_vm0 = vcmp.ne.s16.totalorder %v8556_v34, 0 }
 0x135   : > { %5778 = vmatprep.subr.bf16.mxu1 %v6150_v3  ;;  %v3905_v11 = vsel %vm8557_vm0, 0, %v3888_v5 }
 0x136   : > { %v3946_v49 = vshll.u32 %v3905_v11, 16  ;;  %v3950_v35 = vshrl.u32 %v3905_v11, 16 }
 0x138   : > { %5786 = vmatpush3.bf16.msra.mxu1 %v6150_v3  ;;  %5712 = vmatmul.mubr.bf16.gmra.mrb[20].mxu0 %v8543_v20  ;;  %v3948_v33 = vrot.slane %v3946_v49, 1  ;;  %v3980_v3 = vrot.slane %v3978_v16, 1 }
 0x139   : > { %5715 = vmatprep.mubr.bf16.mxu0 %v7999_v24 }
 0x13a   : > { %v3952_v15 = vor.u32 %v3950_v35, %v3948_v33  ;;  %v3984_v25 = vor.u32 %v3982_v63, %v3980_v3 }
 0x13b   : > { %5516 = vmatmul.mubr.bf16.gmra.mrb[16].mxu1 %v7891_v7  ;;  %v3944_v7 = vor.u32 %v3943_v22, %v3939_v10  ;;  %v3895_v22 = vld [vmem:[#allocation2 + $0x58] sm:$0xff] }
 0x13c   : > { %5519 = vmatprep.mubr.bf16.mxu1 %v7917_v46  ;;  %v3907_v46 = vsel %vm8561_vm7, 0, %v3890_v19  ;;  %v3957_v23 = vsel %vm623_vm13, %v3952_v15, %v3956_v57  ;;  %v3896_v19 = vld [vmem:[#allocation2 + $0x60] sm:$0xff]  ;;  %v3898_v57 = vld [vmem:[#allocation2 + $0x70] sm:$0xff] }
 0x13d   : > { %v3949_v48 = vsel %vm623_vm13, %v3944_v7, %v3948_v33  ;;  %v3962_v61 = vshll.u32 %v3907_v46, 16  ;;  %v3966_v1 = vshrl.u32 %v3907_v46, 16 }
 0x13f   : > { %v3964_v13 = vrot.slane %v3962_v61, 1  ;;  %v3897_v61 = vld [vmem:[#allocation2 + $0x68] sm:$0xff] }
 0x140   : > { %5716 = vmatmul.mubr.bf16.gmra.mrb[24].mxu0 %v8007_v42  ;;  %v3914_v27 = vsel %vm1651_vm4, 0, %v3897_v61  ;;  %vm8572_vm4 = vcmp.ne.s16.totalorder %v8539_v39, 0 }
 0x141   : > { %5719 = vmatprep.mubr.bf16.mxu0 %v8101_v21  ;;  %v3965_v54 = vsel %vm623_vm13, %v3960_v26, %v3964_v13  ;;  %v3968_v8 = vor.u32 %v3966_v1, %v3964_v13  ;;  %v4018_v12 = vshll.u32 %v3914_v27, 16 }
 0x143   : > { %5520 = vmatmul.mubr.bf16.gmra.mrb[20].mxu1 %v7937_v30  ;;  %v3908_v30 = vsel %vm8563_vm9, 0, %v3891_v6  ;;  %v4020_v14 = vrot.slane %v4018_v12, 1 }
 0x144   : > { %5523 = vmatprep.mubr.bf16.mxu1 %v7953_v50  ;;  %v3970_v45 = vshll.u32 %v3908_v30, 16  ;;  %v3974_v52 = vshrl.u32 %v3908_v30, 16  ;;  %v4022_v50 = vshrl.u32 %v3914_v27, 16 }
 0x146   : > { %v3972_v0 = vrot.slane %v3970_v45, 1  ;;  %v3899_v45 = vld [vmem:[#allocation2 + $0x78] sm:$0xff] }
 0x147   : > { %v3916_v31 = vsel %vm8572_vm4, 0, %v3899_v45 }
 0x148   : > { %5720 = vmatmul.mubr.bf16.gmra.mrb[28].mxu0 %v8537_v41  ;;  %v3976_v18 = vor.u32 %v3974_v52, %v3972_v0  ;;  %v3973_v5 = vsel %vm623_vm13, %v3968_v8, %v3972_v0  ;;  %v4034_v52 = vshll.u32 %v3916_v31, 16 }
 0x149   : > { %5739 = vmatprep.mubr.bf16.mxu0 %v3949_v48 }
 0x14a   : > { %v3981_v34 = vsel %vm623_vm13, %v3976_v18, %v3980_v3  ;;  %v4036_v39 = vrot.slane %v4034_v52, 1 }
 0x14b   : > { %5524 = vmatmul.mubr.bf16.gmra.mrb[24].mxu1 %v7967_v36  ;;  %v8565_v36 = vld [vmem:[#allocation30_spill] sm:$0xff] }
 0x14c   : > { %5527 = vmatprep.mubr.bf16.mxu1 %v7981_v4  ;;  %vm8566_vm5 = vcmp.ne.s16.totalorder %v8565_v36, 0  ;;  %v8567_v4 = vld [vmem:[#allocation33_spill] sm:$0xff]  ;;  %v3901_v36 = vld [vmem:[#allocation2 + $0x88] sm:$0xff] }
 0x14d   : > { %v3910_v32 = vsel %vm8566_vm5, 0, %v3893_v47  ;;  %vm8568_vm3 = vcmp.ne.s16.totalorder %v8567_v4, 0 }
 0x14e   : > { %v3911_v56 = vsel %vm8568_vm3, 0, %v3894_v28  ;;  %v3986_v17 = vshll.u32 %v3910_v32, 16  ;;  %v3990_v11 = vshrl.u32 %v3910_v32, 16  ;;  %v4038_v28 = vshrl.u32 %v3916_v31, 16 }
 0x14f   : > { %v3994_v10 = vshll.u32 %v3911_v56, 16  ;;  %v3998_v51 = vshrl.u32 %v3911_v56, 16 }
 0x150   : > { %5740 = vmatmul.mubr.bf16.vlgmr.msra.gmra.mrb[0].mxu0 %v3957_v23  ;;  %v3988_v49 = vrot.slane %v3986_v17, 1  ;;  %v3900_v23 = vld [vmem:[#allocation2 + $0x80] sm:$0xff]  ;;  %v4040_v44 = vor.u32 %v4038_v28, %v4036_v39 }
 0x151   : > { %5743 = vmatprep.mubr.bf16.mxu0 %v3965_v54  ;;  %v3996_v33 = vrot.slane %v3994_v10, 1 }
 0x152   : > { %v3992_v7 = vor.u32 %v3990_v11, %v3988_v49  ;;  %v3989_v46 = vsel %vm623_vm13, %v3984_v25, %v3988_v49 }
 0x153   : > { %5528 = vmatmul.mubr.bf16.gmra.mrb[28].mxu1 %v7989_v60  ;;  %v8569_v60 = vld [vmem:[#allocation35_spill] sm:$0xff]  ;;  %v4000_v2 = vor.u32 %v3998_v51, %v3996_v33 }
 0x154   : > { %5563 = vmatprep.mubr.bf16.mxu1 %v7602_v9  ;;  %vm8570_vm6 = vcmp.ne.s16.totalorder %v8569_v60, 0  ;;  %v3913_v9 = vsel %vm8571_vm15, 0, %v3896_v19  ;;  %v3997_v35 = vsel %vm623_vm13, %v3992_v7, %v3996_v33 }
 0x155   : > { %v3912_v59 = vsel %vm8570_vm6, 0, %v3895_v22  ;;  %v4010_v38 = vshll.u32 %v3913_v9, 16  ;;  %v4014_v26 = vshrl.u32 %v3913_v9, 16 }
 0x156   : > { %v4002_v55 = vshll.u32 %v3912_v59, 16  ;;  %v4006_v48 = vshrl.u32 %v3912_v59, 16 }
 0x157   : > { %v4012_v15 = vrot.slane %v4010_v38, 1 }
 0x158   : > { %5744 = vmatmul.mubr.bf16.gmra.mrb[4].mxu0 %v3973_v5  ;;  %v4004_v6 = vrot.slane %v4002_v55, 1 }
 0x159   : > { %5747 = vmatprep.mubr.bf16.mxu0 %v3981_v34  ;;  %v4016_v1 = vor.u32 %v4014_v26, %v4012_v15  ;;  %v3903_v34 = vld [vmem:[#allocation2 + $0x98] sm:$0x1] }
 0x15a   : > { %v4005_v30 = vsel %vm623_vm13, %v4000_v2, %v4004_v6 }
 0x15b   : > { %5564 = vmatmul.mubr.bf16.vlgmr.msra.gmra.mrb[16].mxu1 %v7624_v62  ;;  %v4008_v62 = vor.u32 %v4006_v48, %v4004_v6  ;;  %v4021_v16 = vsel %vm623_vm13, %v4016_v1, %v4020_v14 }
 0x15c   : > { %5567 = vmatprep.mubr.bf16.mxu1 %v8534_v58  ;;  %v3915_v58 = vsel %vm1652_vm2, 0, %v3898_v57 }
 0x15d   : > { %v4013_v13 = vsel %vm623_vm13, %v4008_v62, %v4012_v15  ;;  %v4026_v37 = vshll.u32 %v3915_v58, 16  ;;  %v4030_v47 = vshrl.u32 %v3915_v58, 16 }
 0x15f   : > { %v4028_v54 = vrot.slane %v4026_v37, 1 }
 0x160   : > { %5748 = vmatmul.mubr.bf16.gmra.mrb[8].mxu0 %v3989_v46 }
 0x161   : > { %5751 = vmatprep.mubr.bf16.mxu0 %v3997_v35  ;;  %v4032_v32 = vor.u32 %v4030_v47, %v4028_v54 }
 0x163   : > { %5568 = vmatmul.mubr.bf16.gmra.mrb[20].mxu1 %v8538_v29  ;;  %v4024_v29 = vor.u32 %v4022_v50, %v4020_v14  ;;  %v4037_v4 = vsel %vm623_vm13, %v4032_v32, %v4036_v39 }
 0x164   : > { %5571 = vmatprep.mubr.bf16.mxu1 %v8543_v20  ;;  %v3917_v20 = vsel %vm1654_vm10, 0, %v3900_v23 }
 0x165   : > { %v4029_v0 = vsel %vm623_vm13, %v4024_v29, %v4028_v54  ;;  %v4042_v8 = vshll.u32 %v3917_v20, 16  ;;  %v4046_v56 = vshrl.u32 %v3917_v20, 16 }
 0x167   : > { %v4044_v18 = vrot.slane %v4042_v8, 1 }
 0x168   : > { %5752 = vmatmul.mubr.bf16.gmra.mrb[12].mxu0 %v4005_v30 }
 0x169   : > { %5755 = vmatprep.mubr.bf16.mxu0 %v4013_v13  ;;  %v4045_v17 = vsel %vm623_vm13, %v4040_v44, %v4044_v18  ;;  %v4048_v11 = vor.u32 %v4046_v56, %v4044_v18 }
 0x16b   : > { %5572 = vmatmul.mubr.bf16.gmra.mrb[24].mxu1 %v7999_v24  ;;  %v3918_v24 = vsel %vm1655_vm11, 0, %v3901_v36 }
 0x16c   : > { %5575 = vmatprep.mubr.bf16.mxu1 %v8007_v42  ;;  %v3919_v42 = vsel %vm1656_vm1, 0, %v8537_v41  ;;  %v4050_v3 = vshll.u32 %v3918_v24, 16  ;;  %v4054_v5 = vshrl.u32 %v3918_v24, 16 }
 0x16d   : > { %v4058_v63 = vshll.u32 %v3919_v42, 16  ;;  %v4062_v43 = vshrl.u32 %v3919_v42, 16 }
 0x16e   : > { %v4052_v53 = vrot.slane %v4050_v3, 1 }
 0x16f   : > { %v4060_v22 = vrot.slane %v4058_v63, 1 }
 0x170   : > { %5756 = vmatmul.mubr.bf16.gmra.mrb[16].mxu0 %v4021_v16  ;;  %v4056_v10 = vor.u32 %v4054_v5, %v4052_v53  ;;  %v4053_v41 = vsel %vm623_vm13, %v4048_v11, %v4052_v53 }
 0x171   : > { %5759 = vmatprep.mubr.bf16.mxu0 %v4029_v0  ;;  %v4064_v25 = vor.u32 %v4062_v43, %v4060_v22 }
 0x172   : > { %v4061_v19 = vsel %vm623_vm13, %v4056_v10, %v4060_v22 }
 0x173   : > { %5576 = vmatmul.mubr.bf16.gmra.mrb[28].mxu1 %v8101_v21  ;;  %v3920_v21 = vsel %vm1657_vm8, 0, %v3903_v34 }
 0x174   : > { %v4066_v49 = vshll.u32 %v3920_v21, 16 }
 0x176   : > { %v4068_v60 = vrot.slane %v4066_v49, 1 }
 0x178   : > { %5760 = vmatmul.mubr.bf16.gmra.mrb[20].mxu0 %v4037_v4  ;;  %v4069_v59 = vsel %vm623_vm13, %v4064_v25, %v4068_v60 }
 0x179   : > { %5763 = vmatprep.mubr.bf16.mxu0 %v4045_v17 }
 0x180   : > { %5764 = vmatmul.mubr.bf16.gmra.mrb[24].mxu0 %v4053_v41 }
 0x181   : > { %5767 = vmatprep.mubr.bf16.mxu0 %v4061_v19 }
 0x188   : > { %5768 = vmatmul.mubr.bf16.gmra.mrb[28].mxu0 %v4069_v59 }
 0x1ee   : > { %v5501_v7 = vpop.f32.mrb[0].mxu1 }
 0x1ef   : > { %v2347_v33 = vpop.f32.mrb[1].mxu1 }
 0x1f0   : > { %v5502_v9 = vpop.f32.mrb[2].mxu1 }
 0x1f1   : > { %v2350_v55 = vpop.f32.mrb[3].mxu1 }
 0x1f6   : > { %v5505_v46 = vpop.f32.mrb[4].mxu1 }
 0x1f7   : > { %v2363_v40 = vpop.f32.mrb[5].mxu1 }
 0x1f8   : > { %v5506_v51 = vpop.f32.mrb[6].mxu1 }
 0x1f9   : > { %v2366_v35 = vpop.f32.mrb[7].mxu1 }
 0x1fe   : > { %v5509_v48 = vpop.f32.mrb[8].mxu1 }
 0x1ff   : > { %v2379_v38 = vpop.f32.mrb[9].mxu1 }
 0x200   : > { %v5510_v61 = vpop.f32.mrb[10].mxu1 }
 0x201   : > { %v8163_v6 = vpop.f32.mrb[11].mxu1 }
 0x206   : > { %v8165_v57 = vpop.f32.mrb[12].mxu1 }
 0x207   : > { %v8167_v2 = vpop.f32.mrb[13].mxu1 }
 0x208   : > { %v8169_v27 = vpop.f32.mrb[14].mxu1 }
 0x209   : > { %v8171_v62 = vpop.f32.mrb[15].mxu1 }
 0x223   : > { %v5741_v15 = vpop.f32.mrb[0].mxu0 }
 0x224   : > { %v5787_v58 = vadd.f32 %v5741_v15, %v5501_v7  ;;  %v4168_v12 = vpop.f32.mrb[1].mxu0 }
 0x225   : > { %v5788_v30 = vadd.f32 %v4168_v12, %v2347_v33  ;;  %v5742_v26 = vpop.f32.mrb[2].mxu0 }
 0x226   : > { %v5789_v13 = vadd.f32 %v5742_v26, %v5502_v9  ;;  %v4171_v50 = vpop.f32.mrb[3].mxu0  ;;  %v4526_v29 = vmul.f32 %v5787_v58, %v5787_v58 }
 0x227   : > { %v5790_v37 = vadd.f32 %v4171_v50, %v2350_v55  ;;  %v4524_v14 = vmul.f32 %v5788_v30, %v5788_v30 }
 0x228   : > { %v5036_v45 = vpack.c.bf16 %v5789_v13, %v5787_v58  ;;  %v4527_v0 = vmul.f32 %v5789_v13, %v5789_v13 }
 0x229   : > { %v5031_v23 = vpack.c.bf16 %v5790_v37, %v5788_v30  ;;  %v4487_v1 = vadd.f32 %v5790_v37, %v5788_v30  ;;  %v4525_v31 = vmul.f32 %v5790_v37, %v5790_v37 }
 0x22a   : > { %5108 = vst [vmem:[%s8178_s16 + $0x8] sm:$0xff] %v5036_v45  }
 0x22b   : > { %5032 = vst [vmem:[%s8178_s16] sm:$0xff] %v5031_v23   ;;  %v4488_v54 = vadd.f32 %v5787_v58, %v4487_v1  ;;  %v4556_v20 = vadd.f32 %v4525_v31, %v4524_v14  ;;  %v5745_v52 = vpop.f32.mrb[4].mxu0 }
 0x22c   : > { %v5791_v16 = vadd.f32 %v5745_v52, %v5505_v46  ;;  %v4184_v47 = vpop.f32.mrb[5].mxu0 }
 0x22d   : > { %v4557_v28 = vadd.f32 %v4556_v20, %v4526_v29  ;;  %v5792_v8 = vadd.f32 %v4184_v47, %v2363_v40  ;;  %v4489_v36 = vadd.f32 %v5789_v13, %v4488_v54  ;;  %v5746_v39 = vpop.f32.mrb[6].mxu0 }
 0x22e   : > { %v8182_v32 = vpop.f32.mrb[16].mxu1  ;;  %v5793_v24 = vadd.f32 %v5746_v39, %v5506_v51  ;;  %v4187_v44 = vpop.f32.mrb[7].mxu0  ;;  %v4530_v22 = vmul.f32 %v5791_v16, %v5791_v16 }
 0x22f   : > { %v8184_v18 = vpop.f32.mrb[17].mxu1  ;;  %v4490_v42 = vadd.f32 %v5792_v8, %v4489_v36  ;;  %v4528_v3 = vmul.f32 %v5792_v8, %v5792_v8  ;;  %v4558_v4 = vadd.f32 %v4557_v28, %v4527_v0  ;;  %v5794_v56 = vadd.f32 %v4187_v44, %v2366_v35 }
 0x230   : > { %v8186_v17 = vpop.f32.mrb[18].mxu1  ;;  %v5046_v5 = vpack.c.bf16 %v5793_v24, %v5791_v16  ;;  %v4531_v25 = vmul.f32 %v5793_v24, %v5793_v24 }
 0x231   : > { %v8188_v63 = vpop.f32.mrb[19].mxu1  ;;  %v4559_v34 = vadd.f32 %v4558_v4, %v4528_v3  ;;  %v5041_v53 = vpack.c.bf16 %v5794_v56, %v5792_v8  ;;  %v4491_v11 = vadd.f32 %v5794_v56, %v4490_v42  ;;  %v4529_v10 = vmul.f32 %v5794_v56, %v5794_v56 }
 0x232   : > { %5110 = vst [vmem:[%s8178_s16 + $0x18] sm:$0xff] %v5046_v5  }
 0x233   : > { %5109 = vst [vmem:[%s8178_s16 + $0x10] sm:$0xff] %v5041_v53   ;;  %v4492_v21 = vadd.f32 %v5791_v16, %v4491_v11  ;;  %v4560_v41 = vadd.f32 %v4559_v34, %v4529_v10  ;;  %v5749_v43 = vpop.f32.mrb[8].mxu0 }
 0x234   : > { %v5795_v49 = vadd.f32 %v5749_v43, %v5509_v48  ;;  %v4200_v19 = vpop.f32.mrb[9].mxu0 }
 0x235   : > { %v4561_v60 = vadd.f32 %v4560_v41, %v4530_v22  ;;  %v5796_v59 = vadd.f32 %v4200_v19, %v2379_v38  ;;  %v4493_v7 = vadd.f32 %v5793_v24, %v4492_v21  ;;  %v5750_v33 = vpop.f32.mrb[10].mxu0 }
 0x236   : > { %v8192_v9 = vpop.f32.mrb[20].mxu1  ;;  %v5797_v55 = vadd.f32 %v5750_v33, %v5510_v61  ;;  %v4203_v46 = vpop.f32.mrb[11].mxu0  ;;  %v4534_v61 = vmul.f32 %v5795_v49, %v5795_v49 }
 0x237   : > { %v8194_v40 = vpop.f32.mrb[21].mxu1  ;;  %v4494_v51 = vadd.f32 %v5796_v59, %v4493_v7  ;;  %v4532_v35 = vmul.f32 %v5796_v59, %v5796_v59  ;;  %v4562_v15 = vadd.f32 %v4561_v60, %v4531_v25  ;;  %v5798_v58 = vadd.f32 %v4203_v46, %v8163_v6 }
 0x238   : > { %v8197_v48 = vpop.f32.mrb[22].mxu1  ;;  %v5056_v12 = vpack.c.bf16 %v5797_v55, %v5795_v49  ;;  %v4535_v31 = vmul.f32 %v5797_v55, %v5797_v55 }
 0x239   : > { %v8199_v30 = vpop.f32.mrb[23].mxu1  ;;  %v4563_v38 = vadd.f32 %v4562_v15, %v4532_v35  ;;  %v5051_v26 = vpack.c.bf16 %v5798_v58, %v5796_v59  ;;  %v4495_v13 = vadd.f32 %v5798_v58, %v4494_v51  ;;  %v4533_v50 = vmul.f32 %v5798_v58, %v5798_v58 }
 0x23a   : > { %5112 = vst [vmem:[%s8178_s16 + $0x28] sm:$0xff] %v5056_v12  }
 0x23b   : > { %5111 = vst [vmem:[%s8178_s16 + $0x20] sm:$0xff] %v5051_v26   ;;  %v4496_v37 = vadd.f32 %v5795_v49, %v4495_v13  ;;  %v4564_v45 = vadd.f32 %v4563_v38, %v4533_v50  ;;  %v5753_v14 = vpop.f32.mrb[12].mxu0 }
 0x23c   : > { %v5799_v23 = vadd.f32 %v5753_v14, %v8165_v57  ;;  %v4216_v1 = vpop.f32.mrb[13].mxu0 }
 0x23d   : > { %v4565_v6 = vadd.f32 %v4564_v45, %v4534_v61  ;;  %v5800_v29 = vadd.f32 %v4216_v1, %v8167_v2  ;;  %v4497_v54 = vadd.f32 %v5797_v55, %v4496_v37  ;;  %v5754_v20 = vpop.f32.mrb[14].mxu0 }
 0x23e   : > { %v8205_v52 = vpop.f32.mrb[24].mxu1  ;;  %v5801_v16 = vadd.f32 %v5754_v20, %v8169_v27  ;;  %v4219_v47 = vpop.f32.mrb[15].mxu0  ;;  %v4538_v27 = vmul.f32 %v5799_v23, %v5799_v23 }
 0x23f   : > { %v8208_v0 = vpop.f32.mrb[25].mxu1  ;;  %v4498_v28 = vadd.f32 %v5800_v29, %v4497_v54  ;;  %v4536_v8 = vmul.f32 %v5800_v29, %v5800_v29  ;;  %v4566_v36 = vadd.f32 %v4565_v6, %v4535_v31  ;;  %v5802_v57 = vadd.f32 %v4219_v47, %v8171_v62 }
 0x240   : > { %v8211_v39 = vpop.f32.mrb[26].mxu1  ;;  %v5066_v24 = vpack.c.bf16 %v5801_v16, %v5799_v23  ;;  %v4539_v10 = vmul.f32 %v5801_v16, %v5801_v16 }
 0x241   : > { %v8213_v2 = vpop.f32.mrb[27].mxu1  ;;  %v4567_v44 = vadd.f32 %v4566_v36, %v4536_v8  ;;  %v5061_v42 = vpack.c.bf16 %v5802_v57, %v5800_v29  ;;  %v4499_v3 = vadd.f32 %v5802_v57, %v4498_v28  ;;  %v4537_v4 = vmul.f32 %v5802_v57, %v5802_v57 }
 0x242   : > { %5114 = vst [vmem:[%s8178_s16 + $0x38] sm:$0xff] %v5066_v24  }
 0x243   : > { %5113 = vst [vmem:[%s8178_s16 + $0x30] sm:$0xff] %v5061_v42   ;;  %v4500_v56 = vadd.f32 %v5799_v23, %v4499_v3  ;;  %v4568_v5 = vadd.f32 %v4567_v44, %v4537_v4  ;;  %v5757_v34 = vpop.f32.mrb[16].mxu0 }
 0x244   : > { %v5803_v53 = vadd.f32 %v5757_v34, %v8182_v32  ;;  %v4232_v11 = vpop.f32.mrb[17].mxu0 }
 0x245   : > { %v4569_v62 = vadd.f32 %v4568_v5, %v4538_v27  ;;  %v5804_v22 = vadd.f32 %v4232_v11, %v8184_v18  ;;  %v4501_v21 = vadd.f32 %v5801_v16, %v4500_v56  ;;  %v5758_v41 = vpop.f32.mrb[18].mxu0 }
 0x246   : > { %v8219_v43 = vpop.f32.mrb[28].mxu1  ;;  %v5805_v49 = vadd.f32 %v5758_v41, %v8186_v17  ;;  %v4235_v19 = vpop.f32.mrb[19].mxu0  ;;  %v4542_v17 = vmul.f32 %v5803_v53, %v5803_v53 }
 0x247   : > { %v8222_v25 = vpop.f32.mrb[29].mxu1  ;;  %v4502_v60 = vadd.f32 %v5804_v22, %v4501_v21  ;;  %v4540_v59 = vmul.f32 %v5804_v22, %v5804_v22  ;;  %v4570_v7 = vadd.f32 %v4569_v62, %v4539_v10  ;;  %v5806_v32 = vadd.f32 %v4235_v19, %v8188_v63 }
 0x248   : > { %v8225_v33 = vpop.f32.mrb[30].mxu1  ;;  %v5076_v55 = vpack.c.bf16 %v5805_v49, %v5803_v53  ;;  %v4543_v50 = vmul.f32 %v5805_v49, %v5805_v49 }
 0x249   : > { %v8227_v18 = vpop.f32.mrb[31].mxu1  ;;  %v4571_v46 = vadd.f32 %v4570_v7, %v4540_v59  ;;  %v5071_v51 = vpack.c.bf16 %v5806_v32, %v5804_v22  ;;  %v4503_v35 = vadd.f32 %v5806_v32, %v4502_v60  ;;  %v4541_v15 = vmul.f32 %v5806_v32, %v5806_v32 }
 0x24a   : > { %5116 = vst [vmem:[%s8178_s16 + $0x48] sm:$0xff] %v5076_v55  }
 0x24b   : > { %5115 = vst [vmem:[%s8178_s16 + $0x40] sm:$0xff] %v5071_v51   ;;  %v4504_v58 = vadd.f32 %v5803_v53, %v4503_v35  ;;  %v4572_v12 = vadd.f32 %v4571_v46, %v4541_v15  ;;  %v5761_v38 = vpop.f32.mrb[20].mxu0 }
 0x24c   : > { %v5807_v26 = vadd.f32 %v5761_v38, %v8192_v9  ;;  %v4248_v13 = vpop.f32.mrb[21].mxu0 }
 0x24d   : > { %v4573_v63 = vadd.f32 %v4572_v12, %v4542_v17  ;;  %v5808_v61 = vadd.f32 %v4248_v13, %v8194_v40  ;;  %v4505_v37 = vadd.f32 %v5805_v49, %v4504_v58  ;;  %v5762_v45 = vpop.f32.mrb[22].mxu0 }
 0x24e   : > { %v5809_v14 = vadd.f32 %v5762_v45, %v8197_v48  ;;  %v4251_v23 = vpop.f32.mrb[23].mxu0  ;;  %v4546_v28 = vmul.f32 %v5807_v26, %v5807_v26 }
 0x24f   : > { %v4506_v1 = vadd.f32 %v5808_v61, %v4505_v37  ;;  %v4544_v31 = vmul.f32 %v5808_v61, %v5808_v61  ;;  %v4574_v6 = vadd.f32 %v4573_v63, %v4543_v50  ;;  %v5810_v29 = vadd.f32 %v4251_v23, %v8199_v30 }
 0x250   : > { %v5086_v54 = vpack.c.bf16 %v5809_v14, %v5807_v26  ;;  %v4547_v24 = vmul.f32 %v5809_v14, %v5809_v14 }
 0x251   : > { %v4575_v20 = vadd.f32 %v4574_v6, %v4544_v31  ;;  %v5081_v9 = vpack.c.bf16 %v5810_v29, %v5808_v61  ;;  %v4507_v16 = vadd.f32 %v5810_v29, %v4506_v1  ;;  %v4545_v47 = vmul.f32 %v5810_v29, %v5810_v29 }
 0x252   : > { %5118 = vst [vmem:[%s8178_s16 + $0x58] sm:$0xff] %v5086_v54   ;;  %v6162_v31 = vmov 1966171168  }
 0x253   : > { %5117 = vst [vmem:[%s8178_s16 + $0x50] sm:$0xff] %v5081_v9   ;;  %v4508_v40 = vadd.f32 %v5807_v26, %v4507_v16  ;;  %v4576_v8 = vadd.f32 %v4575_v20, %v4545_v47  ;;  %v5765_v36 = vpop.f32.mrb[24].mxu0  ;;  %v4597_v6 = vunpack.c.l.s4 %v6162_v31 }
 0x254   : > { %v5811_v57 = vadd.f32 %v5765_v36, %v8205_v52  ;;  %v4264_v48 = vpop.f32.mrb[25].mxu0 }
 0x255   : > { %v4577_v44 = vadd.f32 %v4576_v8, %v4546_v28  ;;  %v5812_v42 = vadd.f32 %v4264_v48, %v8208_v0  ;;  %v4509_v30 = vadd.f32 %v5809_v14, %v4508_v40  ;;  %v5766_v3 = vpop.f32.mrb[26].mxu0  ;;  %v4598_v16 = vunpack.c.0.s8 %v4597_v6  ;;  %v8573_v8 = vld [vmem:[#allocation3_spill] sm:$0xff] }
 0x256   : > { %v5813_v4 = vadd.f32 %v5766_v3, %v8211_v39  ;;  %v4267_v27 = vpop.f32.mrb[27].mxu0  ;;  %v4550_v21 = vmul.f32 %v5811_v57, %v5811_v57 }
 0x257   : > { %v4510_v56 = vadd.f32 %v5812_v42, %v4509_v30  ;;  %v4548_v5 = vmul.f32 %v5812_v42, %v5812_v42  ;;  %v4578_v34 = vadd.f32 %v4577_v44, %v4547_v24  ;;  %v5814_v53 = vadd.f32 %v4267_v27, %v8213_v2 }
 0x258   : > { %v5096_v11 = vpack.c.bf16 %v5813_v4, %v5811_v57  ;;  %v4551_v60 = vmul.f32 %v5813_v4, %v5813_v4  ;;  %v4601_v36 = vsub.s32 %v4598_v16, %v8573_v8  ;;  %v8574_v24 = vlaneseq }
 0x259   : > { %v4579_v10 = vadd.f32 %v4578_v34, %v4548_v5  ;;  %v5091_v52 = vpack.c.bf16 %v5814_v53, %v5812_v42  ;;  %v4511_v62 = vadd.f32 %v5814_v53, %v4510_v56  ;;  %v4549_v22 = vmul.f32 %v5814_v53, %v5814_v53 }
 0x25a   : > { %5120 = vst [vmem:[%s8178_s16 + $0x68] sm:$0xff] %v5096_v11   ;;  %vm4613_vm13 = vcmp.lt.s32.totalorder %v8574_v24, 256 }
 0x25b   : > { %5119 = vst [vmem:[%s8178_s16 + $0x60] sm:$0xff] %v5091_v52   ;;  %v4512_v0 = vadd.f32 %v5811_v57, %v4511_v62  ;;  %v4580_v41 = vadd.f32 %v4579_v10, %v4549_v22  ;;  %v5769_v49 = vpop.f32.mrb[28].mxu0 }
 0x25c   : > { %v5815_v19 = vadd.f32 %v5769_v49, %v8219_v43  ;;  %v4280_v39 = vpop.f32.mrb[29].mxu0 }
 0x25d   : > { %v4581_v59 = vadd.f32 %v4580_v41, %v4550_v21  ;;  %v5816_v7 = vadd.f32 %v4280_v39, %v8222_v25  ;;  %v4513_v2 = vadd.f32 %v5813_v4, %v4512_v0  ;;  %v5770_v32 = vpop.f32.mrb[30].mxu0 }
 0x25e   : > { %v5817_v55 = vadd.f32 %v5770_v32, %v8225_v33  ;;  %v4283_v46 = vpop.f32.mrb[31].mxu0  ;;  %v4554_v13 = vmul.f32 %v5815_v19, %v5815_v19 }
 0x25f   : > { %v4514_v51 = vadd.f32 %v5816_v7, %v4513_v2  ;;  %v4552_v35 = vmul.f32 %v5816_v7, %v5816_v7  ;;  %v4582_v15 = vadd.f32 %v4581_v59, %v4551_v60  ;;  %v5818_v17 = vadd.f32 %v4283_v46, %v8227_v18 }
 0x260   : > { %v5106_v58 = vpack.c.bf16 %v5817_v55, %v5815_v19  ;;  %v4555_v63 = vmul.f32 %v5817_v55, %v5817_v55 }
 0x261   : > { %v4583_v12 = vadd.f32 %v4582_v15, %v4552_v35  ;;  %v5101_v43 = vpack.c.bf16 %v5818_v17, %v5816_v7  ;;  %v4515_v38 = vadd.f32 %v5818_v17, %v4514_v51  ;;  %v4553_v26 = vmul.f32 %v5818_v17, %v5818_v17 }
 0x262   : > { %5122 = vst [vmem:[%s8178_s16 + $0x78] sm:$0xff] %v5106_v58  }
 0x263   : > { %5121 = vst [vmem:[%s8178_s16 + $0x70] sm:$0xff] %v5101_v43   ;;  %v4516_v25 = vadd.f32 %v5815_v19, %v4515_v38  ;;  %v4584_v50 = vadd.f32 %v4583_v12, %v4553_v26 }
 0x265   : > { %v4517_v61 = vadd.f32 %v5817_v55, %v4516_v25  ;;  %v4585_v37 = vadd.f32 %v4584_v50, %v4554_v13 }
 0x267   : > { %v4518_v33 = vrot.slane %v4517_v61, 4  ;;  %v4586_v45 = vadd.f32 %v4585_v37, %v4555_v63 }
 0x269   : > { %v4519_v14 = vadd.f32 %v4518_v33, %v4517_v61  ;;  %v4587_v23 = vrot.slane %v4586_v45, 4 }
 0x26b   : > { %v4520_v1 = vrot.slane %v4519_v14, 2  ;;  %v4588_v18 = vadd.f32 %v4587_v23, %v4586_v45 }
 0x26d   : > { %v4521_v29 = vadd.f32 %v4520_v1, %v4519_v14  ;;  %v4589_v54 = vrot.slane %v4588_v18, 2 }
 0x26f   : > { %v4522_v20 = vrot.slane %v4521_v29, 1  ;;  %v4590_v9 = vadd.f32 %v4589_v54, %v4588_v18 }
 0x271   : > { %v4591_v47 = vrot.slane %v4590_v9, 1  ;;  %v4523_v28 = vadd.f32 %v4522_v20, %v4521_v29 }
 0x273   : > { %v4592_v40 = vadd.f32 %v4591_v47, %v4590_v9 }
 0x275   : > { %v4595_v57 = vcombine.low %v4523_v28, %v4592_v40 }
 0x277   : > { %v4602_v48 = vrot.slane %v4595_v57, %v4601_v36 }
 0x279   : > { %v4609_v44 = vrot.slane %v4602_v48, %v4601_v36 }
 0x27b   : > { %4615 = vst.msk [vmem:[%s181_s19] sm:$0x3] %vm4613_vm13, %v4609_v44 }
 0x27c PF: > { %s14_s12 = sadd.s32 1, %s6158_s12  }
 0x27d   : > { %p11_p4 = scmp.ge.s32.totalorder %s14_s12, 4  }
 0x27f   :  { %13 = sbr.rel (!%p11_p4) target bundleno = 1 (0x1), region = 78 }

</bundles_post_ra>
